<compile_context>
chip_gen: v7x
topology: tpu7x:2x2x1
jax: 0.10.0
libtpu: 0.0.40
codegen_flags: <defaults>
</compile_context>

<pallas_src>
import functools

import numpy as np
import jax
import jax.numpy as jnp
from jax.experimental import pallas as pl
from jax.experimental.pallas import tpu as pltpu

LOG_2PI = 1.8378770664093453

# ----------------------- model hyper-parameters -----------------------
N_CLASS = 4
X_DIM = 4
LAGS = 1
HIDDEN = 32
BATCH = 2
LAGS_AND_LENGTH = 9            # -> length L = 8


def _leaky_relu(x, slope=0.1):
    return jnp.where(x > 0, x, slope * x)


def _bf16_dot(a, w):
    # Single-pass bf16 MXU matmul with f32 accumulation (TPU default-precision
    # semantics, made explicit so kernel and reference quantize identically).
    return jnp.dot(a.astype(jnp.bfloat16), w.astype(jnp.bfloat16),
                   preferred_element_type=jnp.float32)


# =====================================================================
# Fused kernel: MLP emissions + scaled forward recursion + Viterbi
# =====================================================================
def hmm_fused_kernel(B, L, C, x_dim,
                     xh_ref, xtr_ref, w1_ref, w2_ref, w3_ref, pp_ref,
                     logpx_ref, c_ref):
    hidden = w1_ref.shape[1]
    out_w = w3_ref.shape[1]                      # 2 * C * x_dim
    D = C * x_dim

    b1 = pp_ref[0:1, 0:hidden]
    b2 = pp_ref[1:2, 0:hidden]
    b3 = pp_ref[2:3, 0:out_w]

    # ---------------- MLP (depth=2) ----------------
    h = _leaky_relu(_bf16_dot(xh_ref[...], w1_ref[...]) + b1)
    h = _leaky_relu(_bf16_dot(h, w2_ref[...]) + b2)
    out = _bf16_dot(h, w3_ref[...]) + b3         # (L*B, 2*D): [mus | logvars], dim-major

    # ---------------- Gaussian emission log-probs ----------------
    mus = out[:, 0:D]
    lvs = out[:, D:2 * D]
    xt = xtr_ref[...]                            # (L*B, D): x_t repeated per class
    elem = (-0.5 * (xt - mus) ** 2 * jnp.exp(-lvs)
            - 0.5 * lvs - 0.5 * LOG_2PI)         # (L*B, D)
    # per-class sum over x_dim: dim-major layout -> add x_dim contiguous C-wide blocks
    logp = elem[:, 0:C]
    for i in range(1, x_dim):
        logp = logp + elem[:, i * C:(i + 1) * C]  # (L*B, C), rows time-major: t*B + b

    # ---------------- HMM parameters ----------------
    logA_rows = [pp_ref[3 + j:4 + j, 0:C] for j in range(C)]   # log_A[j, :] as (1, C)
    logpi = pp_ref[3 + C:4 + C, 0:C]                           # (1, C)

    def lse_last(a):                              # (B, C) -> (B, 1)
        m = jnp.max(a, axis=-1, keepdims=True)
        return m + jnp.log(jnp.sum(jnp.exp(a - m), axis=-1, keepdims=True))

    def lse_elems(rows):                          # elementwise LSE over list of (B, C)
        m = rows[0]
        for r in rows[1:]:
            m = jnp.maximum(m, r)
        s = jnp.exp(rows[0] - m)
        for r in rows[1:]:
            s = s + jnp.exp(r - m)
        return m + jnp.log(s)

    # ---------- scaled forward + Viterbi forward (fully unrolled over time) ----------
    lp0 = logp[0:B, :]
    a0 = lp0 + logpi                              # (B, C)
    s0 = lse_last(a0)
    alpha = a0 - s0
    total = s0                                    # running sum of log scalers
    delta = a0
    psis = []                                     # psi for t = 1 .. L-1
    for t in range(1, L):
        lpt = logp[t * B:(t + 1) * B, :]          # (B, C)

        # forward: logsumexp_j(alpha_prev[:, j] + log_A[j, :]), kept 2-D (B, C)
        cand = [alpha[:, j:j + 1] + logA_rows[j] for j in range(C)]
        a_t = lpt + lse_elems(cand)
        s_t = lse_last(a_t)
        alpha = a_t - s_t
        total = total + s_t

        # Viterbi: max_j / argmax_j (delta_prev[:, j] + log_A[j, :])
        vcand = [delta[:, j:j + 1] + logA_rows[j] for j in range(C)]
        best = vcand[0]
        arg = jnp.zeros((B, C), jnp.int32)
        for j in range(1, C):
            gt = vcand[j] > best                  # strict ">" keeps first-max semantics
            arg = jnp.where(gt, j, arg)
            best = jnp.maximum(best, vcand[j])
        delta = best + lpt
        psis.append(arg)

    # ---------------- Viterbi backtrack (fully unrolled) ----------------
    best_v = delta[:, 0:1]
    best_c = jnp.zeros((B, 1), jnp.int32)
    for k in range(1, C):
        v = delta[:, k:k + 1]
        gt = v > best_v
        best_c = jnp.where(gt, k, best_c)
        best_v = jnp.maximum(best_v, v)

    cs = [None] * L
    cs[L - 1] = best_c
    for t in range(L - 2, -1, -1):
        psi_next = psis[t]                        # psi at time t+1
        c_next = cs[t + 1]                        # (B, 1) int32
        c_t = jnp.zeros((B, 1), jnp.int32)
        for k in range(C):
            c_t = jnp.where(c_next == k, psi_next[:, k:k + 1], c_t)
        cs[t] = c_t

    c_ref[...] = jnp.concatenate(cs, axis=1)      # one lane-contiguous (B, L) store
    logpx_ref[...] = total                        # (B, 1)


# =====================================================================
# Wrapper (glue in plain JAX, jitted)
# =====================================================================
def _build_perm(C, x_dim):
    # New column order for the last Linear: mus first, then logvars, each in
    # dim-major / class-fastest order. Original torch layout per class c is
    # [mu_c(0..x_dim-1), logvar_c(0..x_dim-1)].
    D = C * x_dim
    perm = np.empty(2 * D, dtype=np.int32)
    for j in range(D):
        i, c = divmod(j, C)
        perm[j] = c * 2 * x_dim + i
        perm[D + j] = c * 2 * x_dim + x_dim + i
    return perm


@jax.jit
def hmm_forward(x, params):
    B, TT, x_dim = x.shape
    L = TT - LAGS
    C = N_CLASS
    D = C * x_dim

    # lag window (for lags == 1 this is just x[:, :L]; no concat needed)
    if LAGS == 1:
        x_H = x[:, :L]
    else:
        x_H = jnp.concatenate([x[:, i:i + L] for i in range(LAGS)], axis=-1)
    x_t = x[:, LAGS:]                                      # (B, L, x_dim)

    # time-major flatten (row = t*B + b): the kernel reads each timestep as a
    # contiguous sublane slice of the (L*B, C) log-prob block.
    xh2 = x_H.transpose(1, 0, 2).reshape(L * B, LAGS * x_dim)
    xt2 = x_t.transpose(1, 0, 2).reshape(L * B, x_dim)
    xt_rep = jnp.repeat(xt2, C, axis=1)                    # aligned with dim-major mu columns

    # permute last-layer columns -> [all mus | all logvars], dim-major
    perm = _build_perm(C, x_dim)
    W3p = params["W3"][:, perm]
    b3p = params["b3"][perm]

    # pack biases + HMM params into one small array (fewer tiny DMAs)
    logA = jax.nn.log_softmax(params["log_A"], axis=1)
    logpi = jax.nn.log_softmax(params["log_pi"])
    PW = max(HIDDEN, 2 * D, C)
    pp = jnp.zeros((3 + C + 1, PW), jnp.float32)
    pp = pp.at[0, :HIDDEN].set(params["b1"])
    pp = pp.at[1, :HIDDEN].set(params["b2"])
    pp = pp.at[2, :2 * D].set(b3p)
    pp = pp.at[3:3 + C, :C].set(logA)
    pp = pp.at[3 + C, :C].set(logpi)

    vmem = pl.BlockSpec(memory_space=pltpu.MemorySpace.VMEM)
    logpx_b1, c_bl = pl.pallas_call(
        functools.partial(hmm_fused_kernel, B, L, C, x_dim),
        out_shape=(jax.ShapeDtypeStruct((B, 1), jnp.float32),
                   jax.ShapeDtypeStruct((B, L), jnp.int32)),
        in_specs=[vmem] * 6,
        out_specs=(vmem, vmem),
    )(xh2, xt_rep, params["W1"], params["W2"], W3p, pp)
    # TODO(synk): for large B on v7x, add a batch grid with
    # dimension_semantics=("parallel",) so both TensorCores get work.

    return logpx_b1[:, 0], c_bl                            # (B,), (B, L) int32


# =====================================================================
# Pure-JAX reference (for verification; same bf16 matmul quantization)
# =====================================================================
@jax.jit
def hmm_forward_ref(x, params):
    B, TT, x_dim = x.shape
    L = TT - LAGS
    C = N_CLASS
    if LAGS == 1:
        x_H = x[:, :L]
    else:
        x_H = jnp.concatenate([x[:, i:i + L] for i in range(LAGS)], axis=-1)

    h = _leaky_relu(_bf16_dot(x_H, params["W1"]) + params["b1"])
    h = _leaky_relu(_bf16_dot(h, params["W2"]) + params["b2"])
    out = _bf16_dot(h, params["W3"]) + params["b3"]
    out = out.reshape(B, L, C, 2 * x_dim)
    mus, lvs = out[..., :x_dim], out[..., x_dim:]
    xt = x[:, LAGS:][:, :, None, :]
    logp = jnp.sum(-0.5 * (xt - mus) ** 2 * jnp.exp(-lvs) - 0.5 * lvs - 0.5 * LOG_2PI, -1)

    logA = jax.nn.log_softmax(params["log_A"], axis=1)
    logpi = jax.nn.log_softmax(params["log_pi"])

    def lse(a, axis):
        m = jnp.max(a, axis=axis, keepdims=True)
        return (m + jnp.log(jnp.sum(jnp.exp(a - m), axis=axis, keepdims=True))).squeeze(axis)

    # scaled forward pass
    a = logp[:, 0] + logpi
    s = lse(a, -1)
    total = s
    a = a - s[:, None]
    for t in range(1, L):
        tmp = a[:, :, None] + logA[None]
        a = logp[:, t] + lse(tmp, 1)
        s = lse(a, -1)
        total = total + s
        a = a - s[:, None]

    # Viterbi
    delta = logp[:, 0] + logpi
    psis = [jnp.zeros((B, C), jnp.int32)]
    for t in range(1, L):
        tmp = delta[:, :, None] + logA[None]
        psis.append(jnp.argmax(tmp, axis=1).astype(jnp.int32))
        delta = jnp.max(tmp, axis=1) + logp[:, t]
    c = [None] * L
    c[L - 1] = jnp.argmax(delta, axis=-1).astype(jnp.int32)
    for t in range(L - 2, -1, -1):
        c[t] = jnp.take_along_axis(psis[t + 1], c[t + 1][:, None], axis=1)[:, 0]
    return total, jnp.stack(c, axis=1)


# =====================================================================
def init_params(key):
    ks = jax.random.split(key, 8)
    in_size = LAGS * X_DIM
    out_size = N_CLASS * 2 * X_DIM

    def lin(k, fin, fout):
        return jax.random.normal(k, (fin, fout), jnp.float32) / jnp.sqrt(jnp.float32(fin))

    return {
        "log_A": jax.random.normal(ks[0], (N_CLASS, N_CLASS), jnp.float32),
        "log_pi": jax.random.normal(ks[1], (N_CLASS,), jnp.float32),
        "W1": lin(ks[2], in_size, HIDDEN),
        "b1": 0.01 * jax.random.normal(ks[3], (HIDDEN,), jnp.float32),
        "W2": lin(ks[4], HIDDEN, HIDDEN),
        "b2": 0.01 * jax.random.normal(ks[5], (HIDDEN,), jnp.float32),
        "W3": lin(ks[6], HIDDEN, out_size),
        "b3": 0.01 * jax.random.normal(ks[7], (out_size,), jnp.float32),
    }


if __name__ == "__main__":
    key = jax.random.PRNGKey(0)
    kp, kx = jax.random.split(key)
    params = init_params(kp)
    x = jax.random.normal(kx, (BATCH, LAGS_AND_LENGTH, X_DIM), jnp.float32)

    logp_x, c_est = jax.block_until_ready(hmm_forward(x, params))
    logp_ref, c_est_ref = jax.block_until_ready(hmm_forward_ref(x, params))

    assert logp_x.shape == (BATCH,)
    assert c_est.shape == (BATCH, LAGS_AND_LENGTH - LAGS)
    assert bool(jnp.all(jnp.isfinite(logp_x)))
    assert bool(jnp.allclose(logp_x, logp_ref, rtol=1e-3, atol=1e-3)), (logp_x, logp_ref)
    assert bool(jnp.all(c_est == c_est_ref)), (c_est, c_est_ref)

    print("KERNEL_OK")
</pallas_src>

<mosaic_0001>
module attributes {stable_mosaic.version = 11 : i64} {
  func.func @hmm_fused_kernel(%arg0: memref<16x4xf32, #tpu.memory_space<vmem>>, %arg1: memref<16x16xf32, #tpu.memory_space<vmem>>, %arg2: memref<4x32xf32, #tpu.memory_space<vmem>>, %arg3: memref<32x32xf32, #tpu.memory_space<vmem>>, %arg4: memref<32x32xf32, #tpu.memory_space<vmem>>, %arg5: memref<8x32xf32, #tpu.memory_space<vmem>>, %arg6: memref<2x1xf32, #tpu.memory_space<vmem>>, %arg7: memref<2x8xi32, #tpu.memory_space<vmem>>) attributes {dimension_semantics = [], scalar_prefetch = 0 : i64, scratch_operands = 0 : i64, tpu.core_type = #tpu.core_type<tc>} {
    %c0 = arith.constant 0 : index
    %c0_0 = arith.constant 0 : index
    %0 = vector.load %arg5[%c0, %c0_0] : memref<8x32xf32, #tpu.memory_space<vmem>>, vector<1x32xf32>
    %c1 = arith.constant 1 : index
    %c0_1 = arith.constant 0 : index
    %1 = vector.load %arg5[%c1, %c0_1] : memref<8x32xf32, #tpu.memory_space<vmem>>, vector<1x32xf32>
    %c2 = arith.constant 2 : index
    %c0_2 = arith.constant 0 : index
    %2 = vector.load %arg5[%c2, %c0_2] : memref<8x32xf32, #tpu.memory_space<vmem>>, vector<1x32xf32>
    %c0_3 = arith.constant 0 : index
    %c0_4 = arith.constant 0 : index
    %3 = vector.load %arg0[%c0_3, %c0_4] : memref<16x4xf32, #tpu.memory_space<vmem>>, vector<16x4xf32>
    %c0_5 = arith.constant 0 : index
    %c0_6 = arith.constant 0 : index
    %4 = vector.load %arg2[%c0_5, %c0_6] : memref<4x32xf32, #tpu.memory_space<vmem>>, vector<4x32xf32>
    %5 = arith.truncf %3 : vector<16x4xf32> to vector<16x4xbf16>
    %6 = arith.truncf %4 : vector<4x32xf32> to vector<4x32xbf16>
    %cst = arith.constant dense<0.000000e+00> : vector<16x32xf32>
    %7 = tpu.matmul %5, %6, %cst {dimension_numbers = #tpu.dot_dimension_numbers<[1], [0], [0], [1], [0, 0, 1, 1], [], []>} : vector<16x4xbf16>, vector<4x32xbf16>, vector<16x32xf32> -> vector<16x32xf32>
    %8 = vector.broadcast %0 : vector<1x32xf32> to vector<16x32xf32>
    %9 = arith.addf %7, %8 : vector<16x32xf32>
    %cst_7 = arith.constant 0.000000e+00 : f32
    %10 = vector.broadcast %cst_7 : f32 to vector<16x32xf32>
    %11 = arith.cmpf ogt, %9, %10 : vector<16x32xf32>
    %cst_8 = arith.constant 1.000000e-01 : f32
    %12 = vector.broadcast %cst_8 : f32 to vector<16x32xf32>
    %13 = arith.mulf %12, %9 : vector<16x32xf32>
    %14 = arith.select %11, %9, %13 : vector<16x32xi1>, vector<16x32xf32>
    %c0_9 = arith.constant 0 : index
    %c0_10 = arith.constant 0 : index
    %15 = vector.load %arg3[%c0_9, %c0_10] : memref<32x32xf32, #tpu.memory_space<vmem>>, vector<32x32xf32>
    %16 = arith.truncf %14 : vector<16x32xf32> to vector<16x32xbf16>
    %17 = arith.truncf %15 : vector<32x32xf32> to vector<32x32xbf16>
    %cst_11 = arith.constant dense<0.000000e+00> : vector<16x32xf32>
    %18 = tpu.matmul %16, %17, %cst_11 {dimension_numbers = #tpu.dot_dimension_numbers<[1], [0], [0], [1], [0, 0, 1, 1], [], []>} : vector<16x32xbf16>, vector<32x32xbf16>, vector<16x32xf32> -> vector<16x32xf32>
    %19 = vector.broadcast %1 : vector<1x32xf32> to vector<16x32xf32>
    %20 = arith.addf %18, %19 : vector<16x32xf32>
    %cst_12 = arith.constant 0.000000e+00 : f32
    %21 = vector.broadcast %cst_12 : f32 to vector<16x32xf32>
    %22 = arith.cmpf ogt, %20, %21 : vector<16x32xf32>
    %cst_13 = arith.constant 1.000000e-01 : f32
    %23 = vector.broadcast %cst_13 : f32 to vector<16x32xf32>
    %24 = arith.mulf %23, %20 : vector<16x32xf32>
    %25 = arith.select %22, %20, %24 : vector<16x32xi1>, vector<16x32xf32>
    %c0_14 = arith.constant 0 : index
    %c0_15 = arith.constant 0 : index
    %26 = vector.load %arg4[%c0_14, %c0_15] : memref<32x32xf32, #tpu.memory_space<vmem>>, vector<32x32xf32>
    %27 = arith.truncf %25 : vector<16x32xf32> to vector<16x32xbf16>
    %28 = arith.truncf %26 : vector<32x32xf32> to vector<32x32xbf16>
    %cst_16 = arith.constant dense<0.000000e+00> : vector<16x32xf32>
    %29 = tpu.matmul %27, %28, %cst_16 {dimension_numbers = #tpu.dot_dimension_numbers<[1], [0], [0], [1], [0, 0, 1, 1], [], []>} : vector<16x32xbf16>, vector<32x32xbf16>, vector<16x32xf32> -> vector<16x32xf32>
    %30 = vector.broadcast %2 : vector<1x32xf32> to vector<16x32xf32>
    %31 = arith.addf %29, %30 : vector<16x32xf32>
    %32 = vector.extract_strided_slice %31 {offsets = [0, 0], sizes = [16, 16], strides = [1, 1]} : vector<16x32xf32> to vector<16x16xf32>
    %33 = vector.extract_strided_slice %31 {offsets = [0, 16], sizes = [16, 16], strides = [1, 1]} : vector<16x32xf32> to vector<16x16xf32>
    %c0_17 = arith.constant 0 : index
    %c0_18 = arith.constant 0 : index
    %34 = vector.load %arg1[%c0_17, %c0_18] : memref<16x16xf32, #tpu.memory_space<vmem>>, vector<16x16xf32>
    %35 = arith.subf %34, %32 : vector<16x16xf32>
    %36 = arith.mulf %35, %35 : vector<16x16xf32>
    %cst_19 = arith.constant -5.000000e-01 : f32
    %37 = vector.broadcast %cst_19 : f32 to vector<16x16xf32>
    %38 = arith.mulf %37, %36 : vector<16x16xf32>
    %cst_20 = arith.constant 0.000000e+00 : f32
    %39 = vector.broadcast %cst_20 : f32 to vector<16x16xf32>
    %40 = arith.subf %39, %33 : vector<16x16xf32>
    %41 = math.exp %40 : vector<16x16xf32>
    %42 = arith.mulf %38, %41 : vector<16x16xf32>
    %cst_21 = arith.constant 5.000000e-01 : f32
    %43 = vector.broadcast %cst_21 : f32 to vector<16x16xf32>
    %44 = arith.mulf %43, %33 : vector<16x16xf32>
    %45 = arith.subf %42, %44 : vector<16x16xf32>
    %cst_22 = arith.constant 0.918938517 : f32
    %46 = vector.broadcast %cst_22 : f32 to vector<16x16xf32>
    %47 = arith.subf %45, %46 : vector<16x16xf32>
    %48 = vector.extract_strided_slice %47 {offsets = [0, 0], sizes = [16, 4], strides = [1, 1]} : vector<16x16xf32> to vector<16x4xf32>
    %49 = vector.extract_strided_slice %47 {offsets = [0, 4], sizes = [16, 4], strides = [1, 1]} : vector<16x16xf32> to vector<16x4xf32>
    %50 = arith.addf %48, %49 : vector<16x4xf32>
    %51 = vector.extract_strided_slice %47 {offsets = [0, 8], sizes = [16, 4], strides = [1, 1]} : vector<16x16xf32> to vector<16x4xf32>
    %52 = arith.addf %50, %51 : vector<16x4xf32>
    %53 = vector.extract_strided_slice %47 {offsets = [0, 12], sizes = [16, 4], strides = [1, 1]} : vector<16x16xf32> to vector<16x4xf32>
    %54 = arith.addf %52, %53 : vector<16x4xf32>
    %c3 = arith.constant 3 : index
    %c0_23 = arith.constant 0 : index
    %55 = vector.load %arg5[%c3, %c0_23] : memref<8x32xf32, #tpu.memory_space<vmem>>, vector<1x4xf32>
    %c4 = arith.constant 4 : index
    %c0_24 = arith.constant 0 : index
    %56 = vector.load %arg5[%c4, %c0_24] : memref<8x32xf32, #tpu.memory_space<vmem>>, vector<1x4xf32>
    %c5 = arith.constant 5 : index
    %c0_25 = arith.constant 0 : index
    %57 = vector.load %arg5[%c5, %c0_25] : memref<8x32xf32, #tpu.memory_space<vmem>>, vector<1x4xf32>
    %c6 = arith.constant 6 : index
    %c0_26 = arith.constant 0 : index
    %58 = vector.load %arg5[%c6, %c0_26] : memref<8x32xf32, #tpu.memory_space<vmem>>, vector<1x4xf32>
    %c7 = arith.constant 7 : index
    %c0_27 = arith.constant 0 : index
    %59 = vector.load %arg5[%c7, %c0_27] : memref<8x32xf32, #tpu.memory_space<vmem>>, vector<1x4xf32>
    %60 = vector.extract_strided_slice %54 {offsets = [0, 0], sizes = [2, 4], strides = [1, 1]} : vector<16x4xf32> to vector<2x4xf32>
    %61 = vector.broadcast %59 : vector<1x4xf32> to vector<2x4xf32>
    %62 = arith.addf %60, %61 : vector<2x4xf32>
    %cst_28 = arith.constant dense<0xFF800000> : vector<2xf32>
    %63 = vector.multi_reduction <maximumf>, %62, %cst_28 [1] : vector<2x4xf32> to vector<2xf32>
    %64 = vector.shape_cast %63 : vector<2xf32> to vector<2x1xf32>
    %65 = vector.broadcast %64 : vector<2x1xf32> to vector<2x4xf32>
    %66 = arith.subf %62, %65 : vector<2x4xf32>
    %67 = math.exp %66 : vector<2x4xf32>
    %cst_29 = arith.constant dense<0.000000e+00> : vector<2xf32>
    %68 = vector.multi_reduction <add>, %67, %cst_29 [1] : vector<2x4xf32> to vector<2xf32>
    %69 = vector.shape_cast %68 : vector<2xf32> to vector<2x1xf32>
    %70 = math.log %69 : vector<2x1xf32>
    %71 = arith.addf %64, %70 : vector<2x1xf32>
    %72 = vector.broadcast %71 : vector<2x1xf32> to vector<2x4xf32>
    %73 = arith.subf %62, %72 : vector<2x4xf32>
    %74 = vector.extract_strided_slice %54 {offsets = [2, 0], sizes = [2, 4], strides = [1, 1]} : vector<16x4xf32> to vector<2x4xf32>
    %75 = vector.extract_strided_slice %73 {offsets = [0, 0], sizes = [2, 1], strides = [1, 1]} : vector<2x4xf32> to vector<2x1xf32>
    %76 = vector.broadcast %75 : vector<2x1xf32> to vector<2x4xf32>
    %77 = vector.broadcast %55 : vector<1x4xf32> to vector<2x4xf32>
    %78 = arith.addf %76, %77 : vector<2x4xf32>
    %79 = vector.extract_strided_slice %73 {offsets = [0, 1], sizes = [2, 1], strides = [1, 1]} : vector<2x4xf32> to vector<2x1xf32>
    %80 = vector.broadcast %79 : vector<2x1xf32> to vector<2x4xf32>
    %81 = vector.broadcast %56 : vector<1x4xf32> to vector<2x4xf32>
    %82 = arith.addf %80, %81 : vector<2x4xf32>
    %83 = vector.extract_strided_slice %73 {offsets = [0, 2], sizes = [2, 1], strides = [1, 1]} : vector<2x4xf32> to vector<2x1xf32>
    %84 = vector.broadcast %83 : vector<2x1xf32> to vector<2x4xf32>
    %85 = vector.broadcast %57 : vector<1x4xf32> to vector<2x4xf32>
    %86 = arith.addf %84, %85 : vector<2x4xf32>
    %87 = vector.extract_strided_slice %73 {offsets = [0, 3], sizes = [2, 1], strides = [1, 1]} : vector<2x4xf32> to vector<2x1xf32>
    %88 = vector.broadcast %87 : vector<2x1xf32> to vector<2x4xf32>
    %89 = vector.broadcast %58 : vector<1x4xf32> to vector<2x4xf32>
    %90 = arith.addf %88, %89 : vector<2x4xf32>
    %91 = arith.maximumf %78, %82 : vector<2x4xf32>
    %92 = arith.maximumf %91, %86 : vector<2x4xf32>
    %93 = arith.maximumf %92, %90 : vector<2x4xf32>
    %94 = arith.subf %78, %93 : vector<2x4xf32>
    %95 = math.exp %94 : vector<2x4xf32>
    %96 = arith.subf %82, %93 : vector<2x4xf32>
    %97 = math.exp %96 : vector<2x4xf32>
    %98 = arith.addf %95, %97 : vector<2x4xf32>
    %99 = arith.subf %86, %93 : vector<2x4xf32>
    %100 = math.exp %99 : vector<2x4xf32>
    %101 = arith.addf %98, %100 : vector<2x4xf32>
    %102 = arith.subf %90, %93 : vector<2x4xf32>
    %103 = math.exp %102 : vector<2x4xf32>
    %104 = arith.addf %101, %103 : vector<2x4xf32>
    %105 = math.log %104 : vector<2x4xf32>
    %106 = arith.addf %93, %105 : vector<2x4xf32>
    %107 = arith.addf %74, %106 : vector<2x4xf32>
    %cst_30 = arith.constant dense<0xFF800000> : vector<2xf32>
    %108 = vector.multi_reduction <maximumf>, %107, %cst_30 [1] : vector<2x4xf32> to vector<2xf32>
    %109 = vector.shape_cast %108 : vector<2xf32> to vector<2x1xf32>
    %110 = vector.broadcast %109 : vector<2x1xf32> to vector<2x4xf32>
    %111 = arith.subf %107, %110 : vector<2x4xf32>
    %112 = math.exp %111 : vector<2x4xf32>
    %cst_31 = arith.constant dense<0.000000e+00> : vector<2xf32>
    %113 = vector.multi_reduction <add>, %112, %cst_31 [1] : vector<2x4xf32> to vector<2xf32>
    %114 = vector.shape_cast %113 : vector<2xf32> to vector<2x1xf32>
    %115 = math.log %114 : vector<2x1xf32>
    %116 = arith.addf %109, %115 : vector<2x1xf32>
    %117 = vector.broadcast %116 : vector<2x1xf32> to vector<2x4xf32>
    %118 = arith.subf %107, %117 : vector<2x4xf32>
    %119 = arith.addf %71, %116 : vector<2x1xf32>
    %120 = vector.extract_strided_slice %62 {offsets = [0, 0], sizes = [2, 1], strides = [1, 1]} : vector<2x4xf32> to vector<2x1xf32>
    %121 = vector.broadcast %120 : vector<2x1xf32> to vector<2x4xf32>
    %122 = vector.broadcast %55 : vector<1x4xf32> to vector<2x4xf32>
    %123 = arith.addf %121, %122 : vector<2x4xf32>
    %124 = vector.extract_strided_slice %62 {offsets = [0, 1], sizes = [2, 1], strides = [1, 1]} : vector<2x4xf32> to vector<2x1xf32>
    %125 = vector.broadcast %124 : vector<2x1xf32> to vector<2x4xf32>
    %126 = vector.broadcast %56 : vector<1x4xf32> to vector<2x4xf32>
    %127 = arith.addf %125, %126 : vector<2x4xf32>
    %128 = vector.extract_strided_slice %62 {offsets = [0, 2], sizes = [2, 1], strides = [1, 1]} : vector<2x4xf32> to vector<2x1xf32>
    %129 = vector.broadcast %128 : vector<2x1xf32> to vector<2x4xf32>
    %130 = vector.broadcast %57 : vector<1x4xf32> to vector<2x4xf32>
    %131 = arith.addf %129, %130 : vector<2x4xf32>
    %132 = vector.extract_strided_slice %62 {offsets = [0, 3], sizes = [2, 1], strides = [1, 1]} : vector<2x4xf32> to vector<2x1xf32>
    %133 = vector.broadcast %132 : vector<2x1xf32> to vector<2x4xf32>
    %134 = vector.broadcast %58 : vector<1x4xf32> to vector<2x4xf32>
    %135 = arith.addf %133, %134 : vector<2x4xf32>
    %c0_i32 = arith.constant 0 : i32
    %136 = vector.broadcast %c0_i32 : i32 to vector<2x4xi32>
    %137 = arith.cmpf ogt, %127, %123 : vector<2x4xf32>
    %c1_i32 = arith.constant 1 : i32
    %138 = vector.broadcast %c1_i32 : i32 to vector<2x4xi32>
    %139 = arith.select %137, %138, %136 : vector<2x4xi1>, vector<2x4xi32>
    %140 = arith.maximumf %123, %127 : vector<2x4xf32>
    %141 = arith.cmpf ogt, %131, %140 : vector<2x4xf32>
    %c2_i32 = arith.constant 2 : i32
    %142 = vector.broadcast %c2_i32 : i32 to vector<2x4xi32>
    %143 = arith.select %141, %142, %139 : vector<2x4xi1>, vector<2x4xi32>
    %144 = arith.maximumf %140, %131 : vector<2x4xf32>
    %145 = arith.cmpf ogt, %135, %144 : vector<2x4xf32>
    %c3_i32 = arith.constant 3 : i32
    %146 = vector.broadcast %c3_i32 : i32 to vector<2x4xi32>
    %147 = arith.select %145, %146, %143 : vector<2x4xi1>, vector<2x4xi32>
    %148 = arith.maximumf %144, %135 : vector<2x4xf32>
    %149 = arith.addf %148, %74 : vector<2x4xf32>
    %150 = vector.extract_strided_slice %54 {offsets = [4, 0], sizes = [2, 4], strides = [1, 1]} : vector<16x4xf32> to vector<2x4xf32>
    %151 = vector.extract_strided_slice %118 {offsets = [0, 0], sizes = [2, 1], strides = [1, 1]} : vector<2x4xf32> to vector<2x1xf32>
    %152 = vector.broadcast %151 : vector<2x1xf32> to vector<2x4xf32>
    %153 = vector.broadcast %55 : vector<1x4xf32> to vector<2x4xf32>
    %154 = arith.addf %152, %153 : vector<2x4xf32>
    %155 = vector.extract_strided_slice %118 {offsets = [0, 1], sizes = [2, 1], strides = [1, 1]} : vector<2x4xf32> to vector<2x1xf32>
    %156 = vector.broadcast %155 : vector<2x1xf32> to vector<2x4xf32>
    %157 = vector.broadcast %56 : vector<1x4xf32> to vector<2x4xf32>
    %158 = arith.addf %156, %157 : vector<2x4xf32>
    %159 = vector.extract_strided_slice %118 {offsets = [0, 2], sizes = [2, 1], strides = [1, 1]} : vector<2x4xf32> to vector<2x1xf32>
    %160 = vector.broadcast %159 : vector<2x1xf32> to vector<2x4xf32>
    %161 = vector.broadcast %57 : vector<1x4xf32> to vector<2x4xf32>
    %162 = arith.addf %160, %161 : vector<2x4xf32>
    %163 = vector.extract_strided_slice %118 {offsets = [0, 3], sizes = [2, 1], strides = [1, 1]} : vector<2x4xf32> to vector<2x1xf32>
    %164 = vector.broadcast %163 : vector<2x1xf32> to vector<2x4xf32>
    %165 = vector.broadcast %58 : vector<1x4xf32> to vector<2x4xf32>
    %166 = arith.addf %164, %165 : vector<2x4xf32>
    %167 = arith.maximumf %154, %158 : vector<2x4xf32>
    %168 = arith.maximumf %167, %162 : vector<2x4xf32>
    %169 = arith.maximumf %168, %166 : vector<2x4xf32>
    %170 = arith.subf %154, %169 : vector<2x4xf32>
    %171 = math.exp %170 : vector<2x4xf32>
    %172 = arith.subf %158, %169 : vector<2x4xf32>
    %173 = math.exp %172 : vector<2x4xf32>
    %174 = arith.addf %171, %173 : vector<2x4xf32>
    %175 = arith.subf %162, %169 : vector<2x4xf32>
    %176 = math.exp %175 : vector<2x4xf32>
    %177 = arith.addf %174, %176 : vector<2x4xf32>
    %178 = arith.subf %166, %169 : vector<2x4xf32>
    %179 = math.exp %178 : vector<2x4xf32>
    %180 = arith.addf %177, %179 : vector<2x4xf32>
    %181 = math.log %180 : vector<2x4xf32>
    %182 = arith.addf %169, %181 : vector<2x4xf32>
    %183 = arith.addf %150, %182 : vector<2x4xf32>
    %cst_32 = arith.constant dense<0xFF800000> : vector<2xf32>
    %184 = vector.multi_reduction <maximumf>, %183, %cst_32 [1] : vector<2x4xf32> to vector<2xf32>
    %185 = vector.shape_cast %184 : vector<2xf32> to vector<2x1xf32>
    %186 = vector.broadcast %185 : vector<2x1xf32> to vector<2x4xf32>
    %187 = arith.subf %183, %186 : vector<2x4xf32>
    %188 = math.exp %187 : vector<2x4xf32>
    %cst_33 = arith.constant dense<0.000000e+00> : vector<2xf32>
    %189 = vector.multi_reduction <add>, %188, %cst_33 [1] : vector<2x4xf32> to vector<2xf32>
    %190 = vector.shape_cast %189 : vector<2xf32> to vector<2x1xf32>
    %191 = math.log %190 : vector<2x1xf32>
    %192 = arith.addf %185, %191 : vector<2x1xf32>
    %193 = vector.broadcast %192 : vector<2x1xf32> to vector<2x4xf32>
    %194 = arith.subf %183, %193 : vector<2x4xf32>
    %195 = arith.addf %119, %192 : vector<2x1xf32>
    %196 = vector.extract_strided_slice %149 {offsets = [0, 0], sizes = [2, 1], strides = [1, 1]} : vector<2x4xf32> to vector<2x1xf32>
    %197 = vector.broadcast %196 : vector<2x1xf32> to vector<2x4xf32>
    %198 = vector.broadcast %55 : vector<1x4xf32> to vector<2x4xf32>
    %199 = arith.addf %197, %198 : vector<2x4xf32>
    %200 = vector.extract_strided_slice %149 {offsets = [0, 1], sizes = [2, 1], strides = [1, 1]} : vector<2x4xf32> to vector<2x1xf32>
    %201 = vector.broadcast %200 : vector<2x1xf32> to vector<2x4xf32>
    %202 = vector.broadcast %56 : vector<1x4xf32> to vector<2x4xf32>
    %203 = arith.addf %201, %202 : vector<2x4xf32>
    %204 = vector.extract_strided_slice %149 {offsets = [0, 2], sizes = [2, 1], strides = [1, 1]} : vector<2x4xf32> to vector<2x1xf32>
    %205 = vector.broadcast %204 : vector<2x1xf32> to vector<2x4xf32>
    %206 = vector.broadcast %57 : vector<1x4xf32> to vector<2x4xf32>
    %207 = arith.addf %205, %206 : vector<2x4xf32>
    %208 = vector.extract_strided_slice %149 {offsets = [0, 3], sizes = [2, 1], strides = [1, 1]} : vector<2x4xf32> to vector<2x1xf32>
    %209 = vector.broadcast %208 : vector<2x1xf32> to vector<2x4xf32>
    %210 = vector.broadcast %58 : vector<1x4xf32> to vector<2x4xf32>
    %211 = arith.addf %209, %210 : vector<2x4xf32>
    %c0_i32_34 = arith.constant 0 : i32
    %212 = vector.broadcast %c0_i32_34 : i32 to vector<2x4xi32>
    %213 = arith.cmpf ogt, %203, %199 : vector<2x4xf32>
    %c1_i32_35 = arith.constant 1 : i32
    %214 = vector.broadcast %c1_i32_35 : i32 to vector<2x4xi32>
    %215 = arith.select %213, %214, %212 : vector<2x4xi1>, vector<2x4xi32>
    %216 = arith.maximumf %199, %203 : vector<2x4xf32>
    %217 = arith.cmpf ogt, %207, %216 : vector<2x4xf32>
    %c2_i32_36 = arith.constant 2 : i32
    %218 = vector.broadcast %c2_i32_36 : i32 to vector<2x4xi32>
    %219 = arith.select %217, %218, %215 : vector<2x4xi1>, vector<2x4xi32>
    %220 = arith.maximumf %216, %207 : vector<2x4xf32>
    %221 = arith.cmpf ogt, %211, %220 : vector<2x4xf32>
    %c3_i32_37 = arith.constant 3 : i32
    %222 = vector.broadcast %c3_i32_37 : i32 to vector<2x4xi32>
    %223 = arith.select %221, %222, %219 : vector<2x4xi1>, vector<2x4xi32>
    %224 = arith.maximumf %220, %211 : vector<2x4xf32>
    %225 = arith.addf %224, %150 : vector<2x4xf32>
    %226 = vector.extract_strided_slice %54 {offsets = [6, 0], sizes = [2, 4], strides = [1, 1]} : vector<16x4xf32> to vector<2x4xf32>
    %227 = vector.extract_strided_slice %194 {offsets = [0, 0], sizes = [2, 1], strides = [1, 1]} : vector<2x4xf32> to vector<2x1xf32>
    %228 = vector.broadcast %227 : vector<2x1xf32> to vector<2x4xf32>
    %229 = vector.broadcast %55 : vector<1x4xf32> to vector<2x4xf32>
    %230 = arith.addf %228, %229 : vector<2x4xf32>
    %231 = vector.extract_strided_slice %194 {offsets = [0, 1], sizes = [2, 1], strides = [1, 1]} : vector<2x4xf32> to vector<2x1xf32>
    %232 = vector.broadcast %231 : vector<2x1xf32> to vector<2x4xf32>
    %233 = vector.broadcast %56 : vector<1x4xf32> to vector<2x4xf32>
    %234 = arith.addf %232, %233 : vector<2x4xf32>
    %235 = vector.extract_strided_slice %194 {offsets = [0, 2], sizes = [2, 1], strides = [1, 1]} : vector<2x4xf32> to vector<2x1xf32>
    %236 = vector.broadcast %235 : vector<2x1xf32> to vector<2x4xf32>
    %237 = vector.broadcast %57 : vector<1x4xf32> to vector<2x4xf32>
    %238 = arith.addf %236, %237 : vector<2x4xf32>
    %239 = vector.extract_strided_slice %194 {offsets = [0, 3], sizes = [2, 1], strides = [1, 1]} : vector<2x4xf32> to vector<2x1xf32>
    %240 = vector.broadcast %239 : vector<2x1xf32> to vector<2x4xf32>
    %241 = vector.broadcast %58 : vector<1x4xf32> to vector<2x4xf32>
    %242 = arith.addf %240, %241 : vector<2x4xf32>
    %243 = arith.maximumf %230, %234 : vector<2x4xf32>
    %244 = arith.maximumf %243, %238 : vector<2x4xf32>
    %245 = arith.maximumf %244, %242 : vector<2x4xf32>
    %246 = arith.subf %230, %245 : vector<2x4xf32>
    %247 = math.exp %246 : vector<2x4xf32>
    %248 = arith.subf %234, %245 : vector<2x4xf32>
    %249 = math.exp %248 : vector<2x4xf32>
    %250 = arith.addf %247, %249 : vector<2x4xf32>
    %251 = arith.subf %238, %245 : vector<2x4xf32>
    %252 = math.exp %251 : vector<2x4xf32>
    %253 = arith.addf %250, %252 : vector<2x4xf32>
    %254 = arith.subf %242, %245 : vector<2x4xf32>
    %255 = math.exp %254 : vector<2x4xf32>
    %256 = arith.addf %253, %255 : vector<2x4xf32>
    %257 = math.log %256 : vector<2x4xf32>
    %258 = arith.addf %245, %257 : vector<2x4xf32>
    %259 = arith.addf %226, %258 : vector<2x4xf32>
    %cst_38 = arith.constant dense<0xFF800000> : vector<2xf32>
    %260 = vector.multi_reduction <maximumf>, %259, %cst_38 [1] : vector<2x4xf32> to vector<2xf32>
    %261 = vector.shape_cast %260 : vector<2xf32> to vector<2x1xf32>
    %262 = vector.broadcast %261 : vector<2x1xf32> to vector<2x4xf32>
    %263 = arith.subf %259, %262 : vector<2x4xf32>
    %264 = math.exp %263 : vector<2x4xf32>
    %cst_39 = arith.constant dense<0.000000e+00> : vector<2xf32>
    %265 = vector.multi_reduction <add>, %264, %cst_39 [1] : vector<2x4xf32> to vector<2xf32>
    %266 = vector.shape_cast %265 : vector<2xf32> to vector<2x1xf32>
    %267 = math.log %266 : vector<2x1xf32>
    %268 = arith.addf %261, %267 : vector<2x1xf32>
    %269 = vector.broadcast %268 : vector<2x1xf32> to vector<2x4xf32>
    %270 = arith.subf %259, %269 : vector<2x4xf32>
    %271 = arith.addf %195, %268 : vector<2x1xf32>
    %272 = vector.extract_strided_slice %225 {offsets = [0, 0], sizes = [2, 1], strides = [1, 1]} : vector<2x4xf32> to vector<2x1xf32>
    %273 = vector.broadcast %272 : vector<2x1xf32> to vector<2x4xf32>
    %274 = vector.broadcast %55 : vector<1x4xf32> to vector<2x4xf32>
    %275 = arith.addf %273, %274 : vector<2x4xf32>
    %276 = vector.extract_strided_slice %225 {offsets = [0, 1], sizes = [2, 1], strides = [1, 1]} : vector<2x4xf32> to vector<2x1xf32>
    %277 = vector.broadcast %276 : vector<2x1xf32> to vector<2x4xf32>
    %278 = vector.broadcast %56 : vector<1x4xf32> to vector<2x4xf32>
    %279 = arith.addf %277, %278 : vector<2x4xf32>
    %280 = vector.extract_strided_slice %225 {offsets = [0, 2], sizes = [2, 1], strides = [1, 1]} : vector<2x4xf32> to vector<2x1xf32>
    %281 = vector.broadcast %280 : vector<2x1xf32> to vector<2x4xf32>
    %282 = vector.broadcast %57 : vector<1x4xf32> to vector<2x4xf32>
    %283 = arith.addf %281, %282 : vector<2x4xf32>
    %284 = vector.extract_strided_slice %225 {offsets = [0, 3], sizes = [2, 1], strides = [1, 1]} : vector<2x4xf32> to vector<2x1xf32>
    %285 = vector.broadcast %284 : vector<2x1xf32> to vector<2x4xf32>
    %286 = vector.broadcast %58 : vector<1x4xf32> to vector<2x4xf32>
    %287 = arith.addf %285, %286 : vector<2x4xf32>
    %c0_i32_40 = arith.constant 0 : i32
    %288 = vector.broadcast %c0_i32_40 : i32 to vector<2x4xi32>
    %289 = arith.cmpf ogt, %279, %275 : vector<2x4xf32>
    %c1_i32_41 = arith.constant 1 : i32
    %290 = vector.broadcast %c1_i32_41 : i32 to vector<2x4xi32>
    %291 = arith.select %289, %290, %288 : vector<2x4xi1>, vector<2x4xi32>
    %292 = arith.maximumf %275, %279 : vector<2x4xf32>
    %293 = arith.cmpf ogt, %283, %292 : vector<2x4xf32>
    %c2_i32_42 = arith.constant 2 : i32
    %294 = vector.broadcast %c2_i32_42 : i32 to vector<2x4xi32>
    %295 = arith.select %293, %294, %291 : vector<2x4xi1>, vector<2x4xi32>
    %296 = arith.maximumf %292, %283 : vector<2x4xf32>
    %297 = arith.cmpf ogt, %287, %296 : vector<2x4xf32>
    %c3_i32_43 = arith.constant 3 : i32
    %298 = vector.broadcast %c3_i32_43 : i32 to vector<2x4xi32>
    %299 = arith.select %297, %298, %295 : vector<2x4xi1>, vector<2x4xi32>
    %300 = arith.maximumf %296, %287 : vector<2x4xf32>
    %301 = arith.addf %300, %226 : vector<2x4xf32>
    %302 = vector.extract_strided_slice %54 {offsets = [8, 0], sizes = [2, 4], strides = [1, 1]} : vector<16x4xf32> to vector<2x4xf32>
    %303 = vector.extract_strided_slice %270 {offsets = [0, 0], sizes = [2, 1], strides = [1, 1]} : vector<2x4xf32> to vector<2x1xf32>
    %304 = vector.broadcast %303 : vector<2x1xf32> to vector<2x4xf32>
    %305 = vector.broadcast %55 : vector<1x4xf32> to vector<2x4xf32>
    %306 = arith.addf %304, %305 : vector<2x4xf32>
    %307 = vector.extract_strided_slice %270 {offsets = [0, 1], sizes = [2, 1], strides = [1, 1]} : vector<2x4xf32> to vector<2x1xf32>
    %308 = vector.broadcast %307 : vector<2x1xf32> to vector<2x4xf32>
    %309 = vector.broadcast %56 : vector<1x4xf32> to vector<2x4xf32>
    %310 = arith.addf %308, %309 : vector<2x4xf32>
    %311 = vector.extract_strided_slice %270 {offsets = [0, 2], sizes = [2, 1], strides = [1, 1]} : vector<2x4xf32> to vector<2x1xf32>
    %312 = vector.broadcast %311 : vector<2x1xf32> to vector<2x4xf32>
    %313 = vector.broadcast %57 : vector<1x4xf32> to vector<2x4xf32>
    %314 = arith.addf %312, %313 : vector<2x4xf32>
    %315 = vector.extract_strided_slice %270 {offsets = [0, 3], sizes = [2, 1], strides = [1, 1]} : vector<2x4xf32> to vector<2x1xf32>
    %316 = vector.broadcast %315 : vector<2x1xf32> to vector<2x4xf32>
    %317 = vector.broadcast %58 : vector<1x4xf32> to vector<2x4xf32>
    %318 = arith.addf %316, %317 : vector<2x4xf32>
    %319 = arith.maximumf %306, %310 : vector<2x4xf32>
    %320 = arith.maximumf %319, %314 : vector<2x4xf32>
    %321 = arith.maximumf %320, %318 : vector<2x4xf32>
    %322 = arith.subf %306, %321 : vector<2x4xf32>
    %323 = math.exp %322 : vector<2x4xf32>
    %324 = arith.subf %310, %321 : vector<2x4xf32>
    %325 = math.exp %324 : vector<2x4xf32>
    %326 = arith.addf %323, %325 : vector<2x4xf32>
    %327 = arith.subf %314, %321 : vector<2x4xf32>
    %328 = math.exp %327 : vector<2x4xf32>
    %329 = arith.addf %326, %328 : vector<2x4xf32>
    %330 = arith.subf %318, %321 : vector<2x4xf32>
    %331 = math.exp %330 : vector<2x4xf32>
    %332 = arith.addf %329, %331 : vector<2x4xf32>
    %333 = math.log %332 : vector<2x4xf32>
    %334 = arith.addf %321, %333 : vector<2x4xf32>
    %335 = arith.addf %302, %334 : vector<2x4xf32>
    %cst_44 = arith.constant dense<0xFF800000> : vector<2xf32>
    %336 = vector.multi_reduction <maximumf>, %335, %cst_44 [1] : vector<2x4xf32> to vector<2xf32>
    %337 = vector.shape_cast %336 : vector<2xf32> to vector<2x1xf32>
    %338 = vector.broadcast %337 : vector<2x1xf32> to vector<2x4xf32>
    %339 = arith.subf %335, %338 : vector<2x4xf32>
    %340 = math.exp %339 : vector<2x4xf32>
    %cst_45 = arith.constant dense<0.000000e+00> : vector<2xf32>
    %341 = vector.multi_reduction <add>, %340, %cst_45 [1] : vector<2x4xf32> to vector<2xf32>
    %342 = vector.shape_cast %341 : vector<2xf32> to vector<2x1xf32>
    %343 = math.log %342 : vector<2x1xf32>
    %344 = arith.addf %337, %343 : vector<2x1xf32>
    %345 = vector.broadcast %344 : vector<2x1xf32> to vector<2x4xf32>
    %346 = arith.subf %335, %345 : vector<2x4xf32>
    %347 = arith.addf %271, %344 : vector<2x1xf32>
    %348 = vector.extract_strided_slice %301 {offsets = [0, 0], sizes = [2, 1], strides = [1, 1]} : vector<2x4xf32> to vector<2x1xf32>
    %349 = vector.broadcast %348 : vector<2x1xf32> to vector<2x4xf32>
    %350 = vector.broadcast %55 : vector<1x4xf32> to vector<2x4xf32>
    %351 = arith.addf %349, %350 : vector<2x4xf32>
    %352 = vector.extract_strided_slice %301 {offsets = [0, 1], sizes = [2, 1], strides = [1, 1]} : vector<2x4xf32> to vector<2x1xf32>
    %353 = vector.broadcast %352 : vector<2x1xf32> to vector<2x4xf32>
    %354 = vector.broadcast %56 : vector<1x4xf32> to vector<2x4xf32>
    %355 = arith.addf %353, %354 : vector<2x4xf32>
    %356 = vector.extract_strided_slice %301 {offsets = [0, 2], sizes = [2, 1], strides = [1, 1]} : vector<2x4xf32> to vector<2x1xf32>
    %357 = vector.broadcast %356 : vector<2x1xf32> to vector<2x4xf32>
    %358 = vector.broadcast %57 : vector<1x4xf32> to vector<2x4xf32>
    %359 = arith.addf %357, %358 : vector<2x4xf32>
    %360 = vector.extract_strided_slice %301 {offsets = [0, 3], sizes = [2, 1], strides = [1, 1]} : vector<2x4xf32> to vector<2x1xf32>
    %361 = vector.broadcast %360 : vector<2x1xf32> to vector<2x4xf32>
    %362 = vector.broadcast %58 : vector<1x4xf32> to vector<2x4xf32>
    %363 = arith.addf %361, %362 : vector<2x4xf32>
    %c0_i32_46 = arith.constant 0 : i32
    %364 = vector.broadcast %c0_i32_46 : i32 to vector<2x4xi32>
    %365 = arith.cmpf ogt, %355, %351 : vector<2x4xf32>
    %c1_i32_47 = arith.constant 1 : i32
    %366 = vector.broadcast %c1_i32_47 : i32 to vector<2x4xi32>
    %367 = arith.select %365, %366, %364 : vector<2x4xi1>, vector<2x4xi32>
    %368 = arith.maximumf %351, %355 : vector<2x4xf32>
    %369 = arith.cmpf ogt, %359, %368 : vector<2x4xf32>
    %c2_i32_48 = arith.constant 2 : i32
    %370 = vector.broadcast %c2_i32_48 : i32 to vector<2x4xi32>
    %371 = arith.select %369, %370, %367 : vector<2x4xi1>, vector<2x4xi32>
    %372 = arith.maximumf %368, %359 : vector<2x4xf32>
    %373 = arith.cmpf ogt, %363, %372 : vector<2x4xf32>
    %c3_i32_49 = arith.constant 3 : i32
    %374 = vector.broadcast %c3_i32_49 : i32 to vector<2x4xi32>
    %375 = arith.select %373, %374, %371 : vector<2x4xi1>, vector<2x4xi32>
    %376 = arith.maximumf %372, %363 : vector<2x4xf32>
    %377 = arith.addf %376, %302 : vector<2x4xf32>
    %378 = vector.extract_strided_slice %54 {offsets = [10, 0], sizes = [2, 4], strides = [1, 1]} : vector<16x4xf32> to vector<2x4xf32>
    %379 = vector.extract_strided_slice %346 {offsets = [0, 0], sizes = [2, 1], strides = [1, 1]} : vector<2x4xf32> to vector<2x1xf32>
    %380 = vector.broadcast %379 : vector<2x1xf32> to vector<2x4xf32>
    %381 = vector.broadcast %55 : vector<1x4xf32> to vector<2x4xf32>
    %382 = arith.addf %380, %381 : vector<2x4xf32>
    %383 = vector.extract_strided_slice %346 {offsets = [0, 1], sizes = [2, 1], strides = [1, 1]} : vector<2x4xf32> to vector<2x1xf32>
    %384 = vector.broadcast %383 : vector<2x1xf32> to vector<2x4xf32>
    %385 = vector.broadcast %56 : vector<1x4xf32> to vector<2x4xf32>
    %386 = arith.addf %384, %385 : vector<2x4xf32>
    %387 = vector.extract_strided_slice %346 {offsets = [0, 2], sizes = [2, 1], strides = [1, 1]} : vector<2x4xf32> to vector<2x1xf32>
    %388 = vector.broadcast %387 : vector<2x1xf32> to vector<2x4xf32>
    %389 = vector.broadcast %57 : vector<1x4xf32> to vector<2x4xf32>
    %390 = arith.addf %388, %389 : vector<2x4xf32>
    %391 = vector.extract_strided_slice %346 {offsets = [0, 3], sizes = [2, 1], strides = [1, 1]} : vector<2x4xf32> to vector<2x1xf32>
    %392 = vector.broadcast %391 : vector<2x1xf32> to vector<2x4xf32>
    %393 = vector.broadcast %58 : vector<1x4xf32> to vector<2x4xf32>
    %394 = arith.addf %392, %393 : vector<2x4xf32>
    %395 = arith.maximumf %382, %386 : vector<2x4xf32>
    %396 = arith.maximumf %395, %390 : vector<2x4xf32>
    %397 = arith.maximumf %396, %394 : vector<2x4xf32>
    %398 = arith.subf %382, %397 : vector<2x4xf32>
    %399 = math.exp %398 : vector<2x4xf32>
    %400 = arith.subf %386, %397 : vector<2x4xf32>
    %401 = math.exp %400 : vector<2x4xf32>
    %402 = arith.addf %399, %401 : vector<2x4xf32>
    %403 = arith.subf %390, %397 : vector<2x4xf32>
    %404 = math.exp %403 : vector<2x4xf32>
    %405 = arith.addf %402, %404 : vector<2x4xf32>
    %406 = arith.subf %394, %397 : vector<2x4xf32>
    %407 = math.exp %406 : vector<2x4xf32>
    %408 = arith.addf %405, %407 : vector<2x4xf32>
    %409 = math.log %408 : vector<2x4xf32>
    %410 = arith.addf %397, %409 : vector<2x4xf32>
    %411 = arith.addf %378, %410 : vector<2x4xf32>
    %cst_50 = arith.constant dense<0xFF800000> : vector<2xf32>
    %412 = vector.multi_reduction <maximumf>, %411, %cst_50 [1] : vector<2x4xf32> to vector<2xf32>
    %413 = vector.shape_cast %412 : vector<2xf32> to vector<2x1xf32>
    %414 = vector.broadcast %413 : vector<2x1xf32> to vector<2x4xf32>
    %415 = arith.subf %411, %414 : vector<2x4xf32>
    %416 = math.exp %415 : vector<2x4xf32>
    %cst_51 = arith.constant dense<0.000000e+00> : vector<2xf32>
    %417 = vector.multi_reduction <add>, %416, %cst_51 [1] : vector<2x4xf32> to vector<2xf32>
    %418 = vector.shape_cast %417 : vector<2xf32> to vector<2x1xf32>
    %419 = math.log %418 : vector<2x1xf32>
    %420 = arith.addf %413, %419 : vector<2x1xf32>
    %421 = vector.broadcast %420 : vector<2x1xf32> to vector<2x4xf32>
    %422 = arith.subf %411, %421 : vector<2x4xf32>
    %423 = arith.addf %347, %420 : vector<2x1xf32>
    %424 = vector.extract_strided_slice %377 {offsets = [0, 0], sizes = [2, 1], strides = [1, 1]} : vector<2x4xf32> to vector<2x1xf32>
    %425 = vector.broadcast %424 : vector<2x1xf32> to vector<2x4xf32>
    %426 = vector.broadcast %55 : vector<1x4xf32> to vector<2x4xf32>
    %427 = arith.addf %425, %426 : vector<2x4xf32>
    %428 = vector.extract_strided_slice %377 {offsets = [0, 1], sizes = [2, 1], strides = [1, 1]} : vector<2x4xf32> to vector<2x1xf32>
    %429 = vector.broadcast %428 : vector<2x1xf32> to vector<2x4xf32>
    %430 = vector.broadcast %56 : vector<1x4xf32> to vector<2x4xf32>
    %431 = arith.addf %429, %430 : vector<2x4xf32>
    %432 = vector.extract_strided_slice %377 {offsets = [0, 2], sizes = [2, 1], strides = [1, 1]} : vector<2x4xf32> to vector<2x1xf32>
    %433 = vector.broadcast %432 : vector<2x1xf32> to vector<2x4xf32>
    %434 = vector.broadcast %57 : vector<1x4xf32> to vector<2x4xf32>
    %435 = arith.addf %433, %434 : vector<2x4xf32>
    %436 = vector.extract_strided_slice %377 {offsets = [0, 3], sizes = [2, 1], strides = [1, 1]} : vector<2x4xf32> to vector<2x1xf32>
    %437 = vector.broadcast %436 : vector<2x1xf32> to vector<2x4xf32>
    %438 = vector.broadcast %58 : vector<1x4xf32> to vector<2x4xf32>
    %439 = arith.addf %437, %438 : vector<2x4xf32>
    %c0_i32_52 = arith.constant 0 : i32
    %440 = vector.broadcast %c0_i32_52 : i32 to vector<2x4xi32>
    %441 = arith.cmpf ogt, %431, %427 : vector<2x4xf32>
    %c1_i32_53 = arith.constant 1 : i32
    %442 = vector.broadcast %c1_i32_53 : i32 to vector<2x4xi32>
    %443 = arith.select %441, %442, %440 : vector<2x4xi1>, vector<2x4xi32>
    %444 = arith.maximumf %427, %431 : vector<2x4xf32>
    %445 = arith.cmpf ogt, %435, %444 : vector<2x4xf32>
    %c2_i32_54 = arith.constant 2 : i32
    %446 = vector.broadcast %c2_i32_54 : i32 to vector<2x4xi32>
    %447 = arith.select %445, %446, %443 : vector<2x4xi1>, vector<2x4xi32>
    %448 = arith.maximumf %444, %435 : vector<2x4xf32>
    %449 = arith.cmpf ogt, %439, %448 : vector<2x4xf32>
    %c3_i32_55 = arith.constant 3 : i32
    %450 = vector.broadcast %c3_i32_55 : i32 to vector<2x4xi32>
    %451 = arith.select %449, %450, %447 : vector<2x4xi1>, vector<2x4xi32>
    %452 = arith.maximumf %448, %439 : vector<2x4xf32>
    %453 = arith.addf %452, %378 : vector<2x4xf32>
    %454 = vector.extract_strided_slice %54 {offsets = [12, 0], sizes = [2, 4], strides = [1, 1]} : vector<16x4xf32> to vector<2x4xf32>
    %455 = vector.extract_strided_slice %422 {offsets = [0, 0], sizes = [2, 1], strides = [1, 1]} : vector<2x4xf32> to vector<2x1xf32>
    %456 = vector.broadcast %455 : vector<2x1xf32> to vector<2x4xf32>
    %457 = vector.broadcast %55 : vector<1x4xf32> to vector<2x4xf32>
    %458 = arith.addf %456, %457 : vector<2x4xf32>
    %459 = vector.extract_strided_slice %422 {offsets = [0, 1], sizes = [2, 1], strides = [1, 1]} : vector<2x4xf32> to vector<2x1xf32>
    %460 = vector.broadcast %459 : vector<2x1xf32> to vector<2x4xf32>
    %461 = vector.broadcast %56 : vector<1x4xf32> to vector<2x4xf32>
    %462 = arith.addf %460, %461 : vector<2x4xf32>
    %463 = vector.extract_strided_slice %422 {offsets = [0, 2], sizes = [2, 1], strides = [1, 1]} : vector<2x4xf32> to vector<2x1xf32>
    %464 = vector.broadcast %463 : vector<2x1xf32> to vector<2x4xf32>
    %465 = vector.broadcast %57 : vector<1x4xf32> to vector<2x4xf32>
    %466 = arith.addf %464, %465 : vector<2x4xf32>
    %467 = vector.extract_strided_slice %422 {offsets = [0, 3], sizes = [2, 1], strides = [1, 1]} : vector<2x4xf32> to vector<2x1xf32>
    %468 = vector.broadcast %467 : vector<2x1xf32> to vector<2x4xf32>
    %469 = vector.broadcast %58 : vector<1x4xf32> to vector<2x4xf32>
    %470 = arith.addf %468, %469 : vector<2x4xf32>
    %471 = arith.maximumf %458, %462 : vector<2x4xf32>
    %472 = arith.maximumf %471, %466 : vector<2x4xf32>
    %473 = arith.maximumf %472, %470 : vector<2x4xf32>
    %474 = arith.subf %458, %473 : vector<2x4xf32>
    %475 = math.exp %474 : vector<2x4xf32>
    %476 = arith.subf %462, %473 : vector<2x4xf32>
    %477 = math.exp %476 : vector<2x4xf32>
    %478 = arith.addf %475, %477 : vector<2x4xf32>
    %479 = arith.subf %466, %473 : vector<2x4xf32>
    %480 = math.exp %479 : vector<2x4xf32>
    %481 = arith.addf %478, %480 : vector<2x4xf32>
    %482 = arith.subf %470, %473 : vector<2x4xf32>
    %483 = math.exp %482 : vector<2x4xf32>
    %484 = arith.addf %481, %483 : vector<2x4xf32>
    %485 = math.log %484 : vector<2x4xf32>
    %486 = arith.addf %473, %485 : vector<2x4xf32>
    %487 = arith.addf %454, %486 : vector<2x4xf32>
    %cst_56 = arith.constant dense<0xFF800000> : vector<2xf32>
    %488 = vector.multi_reduction <maximumf>, %487, %cst_56 [1] : vector<2x4xf32> to vector<2xf32>
    %489 = vector.shape_cast %488 : vector<2xf32> to vector<2x1xf32>
    %490 = vector.broadcast %489 : vector<2x1xf32> to vector<2x4xf32>
    %491 = arith.subf %487, %490 : vector<2x4xf32>
    %492 = math.exp %491 : vector<2x4xf32>
    %cst_57 = arith.constant dense<0.000000e+00> : vector<2xf32>
    %493 = vector.multi_reduction <add>, %492, %cst_57 [1] : vector<2x4xf32> to vector<2xf32>
    %494 = vector.shape_cast %493 : vector<2xf32> to vector<2x1xf32>
    %495 = math.log %494 : vector<2x1xf32>
    %496 = arith.addf %489, %495 : vector<2x1xf32>
    %497 = vector.broadcast %496 : vector<2x1xf32> to vector<2x4xf32>
    %498 = arith.subf %487, %497 : vector<2x4xf32>
    %499 = arith.addf %423, %496 : vector<2x1xf32>
    %500 = vector.extract_strided_slice %453 {offsets = [0, 0], sizes = [2, 1], strides = [1, 1]} : vector<2x4xf32> to vector<2x1xf32>
    %501 = vector.broadcast %500 : vector<2x1xf32> to vector<2x4xf32>
    %502 = vector.broadcast %55 : vector<1x4xf32> to vector<2x4xf32>
    %503 = arith.addf %501, %502 : vector<2x4xf32>
    %504 = vector.extract_strided_slice %453 {offsets = [0, 1], sizes = [2, 1], strides = [1, 1]} : vector<2x4xf32> to vector<2x1xf32>
    %505 = vector.broadcast %504 : vector<2x1xf32> to vector<2x4xf32>
    %506 = vector.broadcast %56 : vector<1x4xf32> to vector<2x4xf32>
    %507 = arith.addf %505, %506 : vector<2x4xf32>
    %508 = vector.extract_strided_slice %453 {offsets = [0, 2], sizes = [2, 1], strides = [1, 1]} : vector<2x4xf32> to vector<2x1xf32>
    %509 = vector.broadcast %508 : vector<2x1xf32> to vector<2x4xf32>
    %510 = vector.broadcast %57 : vector<1x4xf32> to vector<2x4xf32>
    %511 = arith.addf %509, %510 : vector<2x4xf32>
    %512 = vector.extract_strided_slice %453 {offsets = [0, 3], sizes = [2, 1], strides = [1, 1]} : vector<2x4xf32> to vector<2x1xf32>
    %513 = vector.broadcast %512 : vector<2x1xf32> to vector<2x4xf32>
    %514 = vector.broadcast %58 : vector<1x4xf32> to vector<2x4xf32>
    %515 = arith.addf %513, %514 : vector<2x4xf32>
    %c0_i32_58 = arith.constant 0 : i32
    %516 = vector.broadcast %c0_i32_58 : i32 to vector<2x4xi32>
    %517 = arith.cmpf ogt, %507, %503 : vector<2x4xf32>
    %c1_i32_59 = arith.constant 1 : i32
    %518 = vector.broadcast %c1_i32_59 : i32 to vector<2x4xi32>
    %519 = arith.select %517, %518, %516 : vector<2x4xi1>, vector<2x4xi32>
    %520 = arith.maximumf %503, %507 : vector<2x4xf32>
    %521 = arith.cmpf ogt, %511, %520 : vector<2x4xf32>
    %c2_i32_60 = arith.constant 2 : i32
    %522 = vector.broadcast %c2_i32_60 : i32 to vector<2x4xi32>
    %523 = arith.select %521, %522, %519 : vector<2x4xi1>, vector<2x4xi32>
    %524 = arith.maximumf %520, %511 : vector<2x4xf32>
    %525 = arith.cmpf ogt, %515, %524 : vector<2x4xf32>
    %c3_i32_61 = arith.constant 3 : i32
    %526 = vector.broadcast %c3_i32_61 : i32 to vector<2x4xi32>
    %527 = arith.select %525, %526, %523 : vector<2x4xi1>, vector<2x4xi32>
    %528 = arith.maximumf %524, %515 : vector<2x4xf32>
    %529 = arith.addf %528, %454 : vector<2x4xf32>
    %530 = vector.extract_strided_slice %54 {offsets = [14, 0], sizes = [2, 4], strides = [1, 1]} : vector<16x4xf32> to vector<2x4xf32>
    %531 = vector.extract_strided_slice %498 {offsets = [0, 0], sizes = [2, 1], strides = [1, 1]} : vector<2x4xf32> to vector<2x1xf32>
    %532 = vector.broadcast %531 : vector<2x1xf32> to vector<2x4xf32>
    %533 = vector.broadcast %55 : vector<1x4xf32> to vector<2x4xf32>
    %534 = arith.addf %532, %533 : vector<2x4xf32>
    %535 = vector.extract_strided_slice %498 {offsets = [0, 1], sizes = [2, 1], strides = [1, 1]} : vector<2x4xf32> to vector<2x1xf32>
    %536 = vector.broadcast %535 : vector<2x1xf32> to vector<2x4xf32>
    %537 = vector.broadcast %56 : vector<1x4xf32> to vector<2x4xf32>
    %538 = arith.addf %536, %537 : vector<2x4xf32>
    %539 = vector.extract_strided_slice %498 {offsets = [0, 2], sizes = [2, 1], strides = [1, 1]} : vector<2x4xf32> to vector<2x1xf32>
    %540 = vector.broadcast %539 : vector<2x1xf32> to vector<2x4xf32>
    %541 = vector.broadcast %57 : vector<1x4xf32> to vector<2x4xf32>
    %542 = arith.addf %540, %541 : vector<2x4xf32>
    %543 = vector.extract_strided_slice %498 {offsets = [0, 3], sizes = [2, 1], strides = [1, 1]} : vector<2x4xf32> to vector<2x1xf32>
    %544 = vector.broadcast %543 : vector<2x1xf32> to vector<2x4xf32>
    %545 = vector.broadcast %58 : vector<1x4xf32> to vector<2x4xf32>
    %546 = arith.addf %544, %545 : vector<2x4xf32>
    %547 = arith.maximumf %534, %538 : vector<2x4xf32>
    %548 = arith.maximumf %547, %542 : vector<2x4xf32>
    %549 = arith.maximumf %548, %546 : vector<2x4xf32>
    %550 = arith.subf %534, %549 : vector<2x4xf32>
    %551 = math.exp %550 : vector<2x4xf32>
    %552 = arith.subf %538, %549 : vector<2x4xf32>
    %553 = math.exp %552 : vector<2x4xf32>
    %554 = arith.addf %551, %553 : vector<2x4xf32>
    %555 = arith.subf %542, %549 : vector<2x4xf32>
    %556 = math.exp %555 : vector<2x4xf32>
    %557 = arith.addf %554, %556 : vector<2x4xf32>
    %558 = arith.subf %546, %549 : vector<2x4xf32>
    %559 = math.exp %558 : vector<2x4xf32>
    %560 = arith.addf %557, %559 : vector<2x4xf32>
    %561 = math.log %560 : vector<2x4xf32>
    %562 = arith.addf %549, %561 : vector<2x4xf32>
    %563 = arith.addf %530, %562 : vector<2x4xf32>
    %cst_62 = arith.constant dense<0xFF800000> : vector<2xf32>
    %564 = vector.multi_reduction <maximumf>, %563, %cst_62 [1] : vector<2x4xf32> to vector<2xf32>
    %565 = vector.shape_cast %564 : vector<2xf32> to vector<2x1xf32>
    %566 = vector.broadcast %565 : vector<2x1xf32> to vector<2x4xf32>
    %567 = arith.subf %563, %566 : vector<2x4xf32>
    %568 = math.exp %567 : vector<2x4xf32>
    %cst_63 = arith.constant dense<0.000000e+00> : vector<2xf32>
    %569 = vector.multi_reduction <add>, %568, %cst_63 [1] : vector<2x4xf32> to vector<2xf32>
    %570 = vector.shape_cast %569 : vector<2xf32> to vector<2x1xf32>
    %571 = math.log %570 : vector<2x1xf32>
    %572 = arith.addf %565, %571 : vector<2x1xf32>
    %573 = arith.addf %499, %572 : vector<2x1xf32>
    %574 = vector.extract_strided_slice %529 {offsets = [0, 0], sizes = [2, 1], strides = [1, 1]} : vector<2x4xf32> to vector<2x1xf32>
    %575 = vector.broadcast %574 : vector<2x1xf32> to vector<2x4xf32>
    %576 = vector.broadcast %55 : vector<1x4xf32> to vector<2x4xf32>
    %577 = arith.addf %575, %576 : vector<2x4xf32>
    %578 = vector.extract_strided_slice %529 {offsets = [0, 1], sizes = [2, 1], strides = [1, 1]} : vector<2x4xf32> to vector<2x1xf32>
    %579 = vector.broadcast %578 : vector<2x1xf32> to vector<2x4xf32>
    %580 = vector.broadcast %56 : vector<1x4xf32> to vector<2x4xf32>
    %581 = arith.addf %579, %580 : vector<2x4xf32>
    %582 = vector.extract_strided_slice %529 {offsets = [0, 2], sizes = [2, 1], strides = [1, 1]} : vector<2x4xf32> to vector<2x1xf32>
    %583 = vector.broadcast %582 : vector<2x1xf32> to vector<2x4xf32>
    %584 = vector.broadcast %57 : vector<1x4xf32> to vector<2x4xf32>
    %585 = arith.addf %583, %584 : vector<2x4xf32>
    %586 = vector.extract_strided_slice %529 {offsets = [0, 3], sizes = [2, 1], strides = [1, 1]} : vector<2x4xf32> to vector<2x1xf32>
    %587 = vector.broadcast %586 : vector<2x1xf32> to vector<2x4xf32>
    %588 = vector.broadcast %58 : vector<1x4xf32> to vector<2x4xf32>
    %589 = arith.addf %587, %588 : vector<2x4xf32>
    %c0_i32_64 = arith.constant 0 : i32
    %590 = vector.broadcast %c0_i32_64 : i32 to vector<2x4xi32>
    %591 = arith.cmpf ogt, %581, %577 : vector<2x4xf32>
    %c1_i32_65 = arith.constant 1 : i32
    %592 = vector.broadcast %c1_i32_65 : i32 to vector<2x4xi32>
    %593 = arith.select %591, %592, %590 : vector<2x4xi1>, vector<2x4xi32>
    %594 = arith.maximumf %577, %581 : vector<2x4xf32>
    %595 = arith.cmpf ogt, %585, %594 : vector<2x4xf32>
    %c2_i32_66 = arith.constant 2 : i32
    %596 = vector.broadcast %c2_i32_66 : i32 to vector<2x4xi32>
    %597 = arith.select %595, %596, %593 : vector<2x4xi1>, vector<2x4xi32>
    %598 = arith.maximumf %594, %585 : vector<2x4xf32>
    %599 = arith.cmpf ogt, %589, %598 : vector<2x4xf32>
    %c3_i32_67 = arith.constant 3 : i32
    %600 = vector.broadcast %c3_i32_67 : i32 to vector<2x4xi32>
    %601 = arith.select %599, %600, %597 : vector<2x4xi1>, vector<2x4xi32>
    %602 = arith.maximumf %598, %589 : vector<2x4xf32>
    %603 = arith.addf %602, %530 : vector<2x4xf32>
    %604 = vector.extract_strided_slice %603 {offsets = [0, 0], sizes = [2, 1], strides = [1, 1]} : vector<2x4xf32> to vector<2x1xf32>
    %c0_i32_68 = arith.constant 0 : i32
    %605 = vector.broadcast %c0_i32_68 : i32 to vector<2x1xi32>
    %606 = vector.extract_strided_slice %603 {offsets = [0, 1], sizes = [2, 1], strides = [1, 1]} : vector<2x4xf32> to vector<2x1xf32>
    %607 = arith.cmpf ogt, %606, %604 : vector<2x1xf32>
    %c1_i32_69 = arith.constant 1 : i32
    %608 = vector.broadcast %c1_i32_69 : i32 to vector<2x1xi32>
    %609 = arith.select %607, %608, %605 : vector<2x1xi1>, vector<2x1xi32>
    %610 = arith.maximumf %604, %606 : vector<2x1xf32>
    %611 = vector.extract_strided_slice %603 {offsets = [0, 2], sizes = [2, 1], strides = [1, 1]} : vector<2x4xf32> to vector<2x1xf32>
    %612 = arith.cmpf ogt, %611, %610 : vector<2x1xf32>
    %c2_i32_70 = arith.constant 2 : i32
    %613 = vector.broadcast %c2_i32_70 : i32 to vector<2x1xi32>
    %614 = arith.select %612, %613, %609 : vector<2x1xi1>, vector<2x1xi32>
    %615 = arith.maximumf %610, %611 : vector<2x1xf32>
    %616 = vector.extract_strided_slice %603 {offsets = [0, 3], sizes = [2, 1], strides = [1, 1]} : vector<2x4xf32> to vector<2x1xf32>
    %617 = arith.cmpf ogt, %616, %615 : vector<2x1xf32>
    %c3_i32_71 = arith.constant 3 : i32
    %618 = vector.broadcast %c3_i32_71 : i32 to vector<2x1xi32>
    %619 = arith.select %617, %618, %614 : vector<2x1xi1>, vector<2x1xi32>
    %c0_i32_72 = arith.constant 0 : i32
    %620 = vector.broadcast %c0_i32_72 : i32 to vector<2x1xi32>
    %c0_i32_73 = arith.constant 0 : i32
    %621 = vector.broadcast %c0_i32_73 : i32 to vector<2x1xi32>
    %622 = arith.cmpi eq, %619, %621 : vector<2x1xi32>
    %623 = vector.extract_strided_slice %601 {offsets = [0, 0], sizes = [2, 1], strides = [1, 1]} : vector<2x4xi32> to vector<2x1xi32>
    %624 = arith.select %622, %623, %620 : vector<2x1xi1>, vector<2x1xi32>
    %c1_i32_74 = arith.constant 1 : i32
    %625 = vector.broadcast %c1_i32_74 : i32 to vector<2x1xi32>
    %626 = arith.cmpi eq, %619, %625 : vector<2x1xi32>
    %627 = vector.extract_strided_slice %601 {offsets = [0, 1], sizes = [2, 1], strides = [1, 1]} : vector<2x4xi32> to vector<2x1xi32>
    %628 = arith.select %626, %627, %624 : vector<2x1xi1>, vector<2x1xi32>
    %c2_i32_75 = arith.constant 2 : i32
    %629 = vector.broadcast %c2_i32_75 : i32 to vector<2x1xi32>
    %630 = arith.cmpi eq, %619, %629 : vector<2x1xi32>
    %631 = vector.extract_strided_slice %601 {offsets = [0, 2], sizes = [2, 1], strides = [1, 1]} : vector<2x4xi32> to vector<2x1xi32>
    %632 = arith.select %630, %631, %628 : vector<2x1xi1>, vector<2x1xi32>
    %c3_i32_76 = arith.constant 3 : i32
    %633 = vector.broadcast %c3_i32_76 : i32 to vector<2x1xi32>
    %634 = arith.cmpi eq, %619, %633 : vector<2x1xi32>
    %635 = vector.extract_strided_slice %601 {offsets = [0, 3], sizes = [2, 1], strides = [1, 1]} : vector<2x4xi32> to vector<2x1xi32>
    %636 = arith.select %634, %635, %632 : vector<2x1xi1>, vector<2x1xi32>
    %c0_i32_77 = arith.constant 0 : i32
    %637 = vector.broadcast %c0_i32_77 : i32 to vector<2x1xi32>
    %c0_i32_78 = arith.constant 0 : i32
    %638 = vector.broadcast %c0_i32_78 : i32 to vector<2x1xi32>
    %639 = arith.cmpi eq, %636, %638 : vector<2x1xi32>
    %640 = vector.extract_strided_slice %527 {offsets = [0, 0], sizes = [2, 1], strides = [1, 1]} : vector<2x4xi32> to vector<2x1xi32>
    %641 = arith.select %639, %640, %637 : vector<2x1xi1>, vector<2x1xi32>
    %c1_i32_79 = arith.constant 1 : i32
    %642 = vector.broadcast %c1_i32_79 : i32 to vector<2x1xi32>
    %643 = arith.cmpi eq, %636, %642 : vector<2x1xi32>
    %644 = vector.extract_strided_slice %527 {offsets = [0, 1], sizes = [2, 1], strides = [1, 1]} : vector<2x4xi32> to vector<2x1xi32>
    %645 = arith.select %643, %644, %641 : vector<2x1xi1>, vector<2x1xi32>
    %c2_i32_80 = arith.constant 2 : i32
    %646 = vector.broadcast %c2_i32_80 : i32 to vector<2x1xi32>
    %647 = arith.cmpi eq, %636, %646 : vector<2x1xi32>
    %648 = vector.extract_strided_slice %527 {offsets = [0, 2], sizes = [2, 1], strides = [1, 1]} : vector<2x4xi32> to vector<2x1xi32>
    %649 = arith.select %647, %648, %645 : vector<2x1xi1>, vector<2x1xi32>
    %c3_i32_81 = arith.constant 3 : i32
    %650 = vector.broadcast %c3_i32_81 : i32 to vector<2x1xi32>
    %651 = arith.cmpi eq, %636, %650 : vector<2x1xi32>
    %652 = vector.extract_strided_slice %527 {offsets = [0, 3], sizes = [2, 1], strides = [1, 1]} : vector<2x4xi32> to vector<2x1xi32>
    %653 = arith.select %651, %652, %649 : vector<2x1xi1>, vector<2x1xi32>
    %c0_i32_82 = arith.constant 0 : i32
    %654 = vector.broadcast %c0_i32_82 : i32 to vector<2x1xi32>
    %c0_i32_83 = arith.constant 0 : i32
    %655 = vector.broadcast %c0_i32_83 : i32 to vector<2x1xi32>
    %656 = arith.cmpi eq, %653, %655 : vector<2x1xi32>
    %657 = vector.extract_strided_slice %451 {offsets = [0, 0], sizes = [2, 1], strides = [1, 1]} : vector<2x4xi32> to vector<2x1xi32>
    %658 = arith.select %656, %657, %654 : vector<2x1xi1>, vector<2x1xi32>
    %c1_i32_84 = arith.constant 1 : i32
    %659 = vector.broadcast %c1_i32_84 : i32 to vector<2x1xi32>
    %660 = arith.cmpi eq, %653, %659 : vector<2x1xi32>
    %661 = vector.extract_strided_slice %451 {offsets = [0, 1], sizes = [2, 1], strides = [1, 1]} : vector<2x4xi32> to vector<2x1xi32>
    %662 = arith.select %660, %661, %658 : vector<2x1xi1>, vector<2x1xi32>
    %c2_i32_85 = arith.constant 2 : i32
    %663 = vector.broadcast %c2_i32_85 : i32 to vector<2x1xi32>
    %664 = arith.cmpi eq, %653, %663 : vector<2x1xi32>
    %665 = vector.extract_strided_slice %451 {offsets = [0, 2], sizes = [2, 1], strides = [1, 1]} : vector<2x4xi32> to vector<2x1xi32>
    %666 = arith.select %664, %665, %662 : vector<2x1xi1>, vector<2x1xi32>
    %c3_i32_86 = arith.constant 3 : i32
    %667 = vector.broadcast %c3_i32_86 : i32 to vector<2x1xi32>
    %668 = arith.cmpi eq, %653, %667 : vector<2x1xi32>
    %669 = vector.extract_strided_slice %451 {offsets = [0, 3], sizes = [2, 1], strides = [1, 1]} : vector<2x4xi32> to vector<2x1xi32>
    %670 = arith.select %668, %669, %666 : vector<2x1xi1>, vector<2x1xi32>
    %c0_i32_87 = arith.constant 0 : i32
    %671 = vector.broadcast %c0_i32_87 : i32 to vector<2x1xi32>
    %c0_i32_88 = arith.constant 0 : i32
    %672 = vector.broadcast %c0_i32_88 : i32 to vector<2x1xi32>
    %673 = arith.cmpi eq, %670, %672 : vector<2x1xi32>
    %674 = vector.extract_strided_slice %375 {offsets = [0, 0], sizes = [2, 1], strides = [1, 1]} : vector<2x4xi32> to vector<2x1xi32>
    %675 = arith.select %673, %674, %671 : vector<2x1xi1>, vector<2x1xi32>
    %c1_i32_89 = arith.constant 1 : i32
    %676 = vector.broadcast %c1_i32_89 : i32 to vector<2x1xi32>
    %677 = arith.cmpi eq, %670, %676 : vector<2x1xi32>
    %678 = vector.extract_strided_slice %375 {offsets = [0, 1], sizes = [2, 1], strides = [1, 1]} : vector<2x4xi32> to vector<2x1xi32>
    %679 = arith.select %677, %678, %675 : vector<2x1xi1>, vector<2x1xi32>
    %c2_i32_90 = arith.constant 2 : i32
    %680 = vector.broadcast %c2_i32_90 : i32 to vector<2x1xi32>
    %681 = arith.cmpi eq, %670, %680 : vector<2x1xi32>
    %682 = vector.extract_strided_slice %375 {offsets = [0, 2], sizes = [2, 1], strides = [1, 1]} : vector<2x4xi32> to vector<2x1xi32>
    %683 = arith.select %681, %682, %679 : vector<2x1xi1>, vector<2x1xi32>
    %c3_i32_91 = arith.constant 3 : i32
    %684 = vector.broadcast %c3_i32_91 : i32 to vector<2x1xi32>
    %685 = arith.cmpi eq, %670, %684 : vector<2x1xi32>
    %686 = vector.extract_strided_slice %375 {offsets = [0, 3], sizes = [2, 1], strides = [1, 1]} : vector<2x4xi32> to vector<2x1xi32>
    %687 = arith.select %685, %686, %683 : vector<2x1xi1>, vector<2x1xi32>
    %c0_i32_92 = arith.constant 0 : i32
    %688 = vector.broadcast %c0_i32_92 : i32 to vector<2x1xi32>
    %c0_i32_93 = arith.constant 0 : i32
    %689 = vector.broadcast %c0_i32_93 : i32 to vector<2x1xi32>
    %690 = arith.cmpi eq, %687, %689 : vector<2x1xi32>
    %691 = vector.extract_strided_slice %299 {offsets = [0, 0], sizes = [2, 1], strides = [1, 1]} : vector<2x4xi32> to vector<2x1xi32>
    %692 = arith.select %690, %691, %688 : vector<2x1xi1>, vector<2x1xi32>
    %c1_i32_94 = arith.constant 1 : i32
    %693 = vector.broadcast %c1_i32_94 : i32 to vector<2x1xi32>
    %694 = arith.cmpi eq, %687, %693 : vector<2x1xi32>
    %695 = vector.extract_strided_slice %299 {offsets = [0, 1], sizes = [2, 1], strides = [1, 1]} : vector<2x4xi32> to vector<2x1xi32>
    %696 = arith.select %694, %695, %692 : vector<2x1xi1>, vector<2x1xi32>
    %c2_i32_95 = arith.constant 2 : i32
    %697 = vector.broadcast %c2_i32_95 : i32 to vector<2x1xi32>
    %698 = arith.cmpi eq, %687, %697 : vector<2x1xi32>
    %699 = vector.extract_strided_slice %299 {offsets = [0, 2], sizes = [2, 1], strides = [1, 1]} : vector<2x4xi32> to vector<2x1xi32>
    %700 = arith.select %698, %699, %696 : vector<2x1xi1>, vector<2x1xi32>
    %c3_i32_96 = arith.constant 3 : i32
    %701 = vector.broadcast %c3_i32_96 : i32 to vector<2x1xi32>
    %702 = arith.cmpi eq, %687, %701 : vector<2x1xi32>
    %703 = vector.extract_strided_slice %299 {offsets = [0, 3], sizes = [2, 1], strides = [1, 1]} : vector<2x4xi32> to vector<2x1xi32>
    %704 = arith.select %702, %703, %700 : vector<2x1xi1>, vector<2x1xi32>
    %c0_i32_97 = arith.constant 0 : i32
    %705 = vector.broadcast %c0_i32_97 : i32 to vector<2x1xi32>
    %c0_i32_98 = arith.constant 0 : i32
    %706 = vector.broadcast %c0_i32_98 : i32 to vector<2x1xi32>
    %707 = arith.cmpi eq, %704, %706 : vector<2x1xi32>
    %708 = vector.extract_strided_slice %223 {offsets = [0, 0], sizes = [2, 1], strides = [1, 1]} : vector<2x4xi32> to vector<2x1xi32>
    %709 = arith.select %707, %708, %705 : vector<2x1xi1>, vector<2x1xi32>
    %c1_i32_99 = arith.constant 1 : i32
    %710 = vector.broadcast %c1_i32_99 : i32 to vector<2x1xi32>
    %711 = arith.cmpi eq, %704, %710 : vector<2x1xi32>
    %712 = vector.extract_strided_slice %223 {offsets = [0, 1], sizes = [2, 1], strides = [1, 1]} : vector<2x4xi32> to vector<2x1xi32>
    %713 = arith.select %711, %712, %709 : vector<2x1xi1>, vector<2x1xi32>
    %c2_i32_100 = arith.constant 2 : i32
    %714 = vector.broadcast %c2_i32_100 : i32 to vector<2x1xi32>
    %715 = arith.cmpi eq, %704, %714 : vector<2x1xi32>
    %716 = vector.extract_strided_slice %223 {offsets = [0, 2], sizes = [2, 1], strides = [1, 1]} : vector<2x4xi32> to vector<2x1xi32>
    %717 = arith.select %715, %716, %713 : vector<2x1xi1>, vector<2x1xi32>
    %c3_i32_101 = arith.constant 3 : i32
    %718 = vector.broadcast %c3_i32_101 : i32 to vector<2x1xi32>
    %719 = arith.cmpi eq, %704, %718 : vector<2x1xi32>
    %720 = vector.extract_strided_slice %223 {offsets = [0, 3], sizes = [2, 1], strides = [1, 1]} : vector<2x4xi32> to vector<2x1xi32>
    %721 = arith.select %719, %720, %717 : vector<2x1xi1>, vector<2x1xi32>
    %c0_i32_102 = arith.constant 0 : i32
    %722 = vector.broadcast %c0_i32_102 : i32 to vector<2x1xi32>
    %c0_i32_103 = arith.constant 0 : i32
    %723 = vector.broadcast %c0_i32_103 : i32 to vector<2x1xi32>
    %724 = arith.cmpi eq, %721, %723 : vector<2x1xi32>
    %725 = vector.extract_strided_slice %147 {offsets = [0, 0], sizes = [2, 1], strides = [1, 1]} : vector<2x4xi32> to vector<2x1xi32>
    %726 = arith.select %724, %725, %722 : vector<2x1xi1>, vector<2x1xi32>
    %c1_i32_104 = arith.constant 1 : i32
    %727 = vector.broadcast %c1_i32_104 : i32 to vector<2x1xi32>
    %728 = arith.cmpi eq, %721, %727 : vector<2x1xi32>
    %729 = vector.extract_strided_slice %147 {offsets = [0, 1], sizes = [2, 1], strides = [1, 1]} : vector<2x4xi32> to vector<2x1xi32>
    %730 = arith.select %728, %729, %726 : vector<2x1xi1>, vector<2x1xi32>
    %c2_i32_105 = arith.constant 2 : i32
    %731 = vector.broadcast %c2_i32_105 : i32 to vector<2x1xi32>
    %732 = arith.cmpi eq, %721, %731 : vector<2x1xi32>
    %733 = vector.extract_strided_slice %147 {offsets = [0, 2], sizes = [2, 1], strides = [1, 1]} : vector<2x4xi32> to vector<2x1xi32>
    %734 = arith.select %732, %733, %730 : vector<2x1xi1>, vector<2x1xi32>
    %c3_i32_106 = arith.constant 3 : i32
    %735 = vector.broadcast %c3_i32_106 : i32 to vector<2x1xi32>
    %736 = arith.cmpi eq, %721, %735 : vector<2x1xi32>
    %737 = vector.extract_strided_slice %147 {offsets = [0, 3], sizes = [2, 1], strides = [1, 1]} : vector<2x4xi32> to vector<2x1xi32>
    %738 = arith.select %736, %737, %734 : vector<2x1xi1>, vector<2x1xi32>
    %739 = tpu.concatenate %738, %721, %704, %687, %670, %653, %636, %619 in 1 : vector<2x1xi32>, vector<2x1xi32>, vector<2x1xi32>, vector<2x1xi32>, vector<2x1xi32>, vector<2x1xi32>, vector<2x1xi32>, vector<2x1xi32> -> vector<2x8xi32>
    %c0_107 = arith.constant 0 : index
    %c0_108 = arith.constant 0 : index
    %740 = vector.load %arg7[%c0_107, %c0_108] : memref<2x8xi32, #tpu.memory_space<vmem>>, vector<2x8xi32>
    tpu.vector_store %arg7[%c0_107, %c0_108], %739 {strides = array<i32>} : memref<2x8xi32, #tpu.memory_space<vmem>>, vector<2x8xi32>,
    %c0_109 = arith.constant 0 : index
    %c0_110 = arith.constant 0 : index
    %741 = vector.load %arg6[%c0_109, %c0_110] : memref<2x1xf32, #tpu.memory_space<vmem>>, vector<2x1xf32>
    tpu.vector_store %arg6[%c0_109, %c0_110], %573 {strides = array<i32>} : memref<2x1xf32, #tpu.memory_space<vmem>>, vector<2x1xf32>,
    return
  }
}

</mosaic_0001>

<bundles_post_ra>
// kernel: hmm_forward.1
= control target key start
LH: loop header
LB: loop body
LE: loop exit
PB: predicated region body
PF: predicated region fallthrough
CT: control target
= control target key end

     0   :  { %vm43_vm0 = vcmask 1041408   ;;  %v1412_v2 = vmov 0.0   ;;  %vm1413_vm1 = vmmov 0   ;;  %s1899_s0 = inlined_call_operand.vmem [shape: f32[16,4], index: 0, kind: input, shape index: {}]   ;;  %s1900_s1 = inlined_call_operand.vmem [shape: f32[16,16], index: 1, kind: input, shape index: {}]   ;;  %s1901_s2 = inlined_call_operand.vmem [shape: f32[4,32], index: 2, kind: input, shape index: {}]   ;;  %s1902_s3 = inlined_call_operand.vmem [shape: f32[32,32], index: 3, kind: input, shape index: {}]   ;;  %s1903_s4 = inlined_call_operand.vmem [shape: f32[32,32], index: 4, kind: input, shape index: {}]   ;;  %s1904_s5 = inlined_call_operand.vmem [shape: f32[8,32], index: 5, kind: input, shape index: {}]   ;;  %s1905_s6 = inlined_call_operand.vmem [shape: f32[2,1], index: 6, kind: output, shape index: {0}]   ;;  %s1906_s7 = inlined_call_operand.hbm [shape: s32[2,8], index: 7, kind: output, shape index: {1}]  }
   0x1   :  { %v32_v0 = vld [vmem:[%s1901_s2] sm:$0xf]  ;;  %1184 = vmatprep.subr.bf16.mxu0 %v1412_v2  ;;  %1186 = vmatprep.mubr.msk.bf16.mxu0 %vm1413_vm1, %v1412_v2  ;;  %v31_v4 = vld [vmem:[%s1899_s0 + $0x8] sm:$0xff] }
   0x2   :  { %v30_v1 = vld [vmem:[%s1899_s0] sm:$0xff]  ;;  %v34_v3 = vpack.c.bf16 %v32_v0, %v32_v0 }
   0x3   :  { %13 = vsyncpa [#allocation3], 0  ;;  %1190 = vmatprep.subr.bf16.mxu1 %v1412_v2  ;;  %1194 = vmatprep.mubr.msk.bf16.mxu1 %vm1413_vm1, %v1412_v2  ;;  %v33_v6 = vpack.c.bf16 %v31_v4, %v30_v1  ;;  %vm39_vm2 = vcmask 31744   ;;  %v94_v7 = vld [vmem:[%s1902_s3] sm:$0xff]  ;;  %v95_v8 = vld [vmem:[%s1902_s3 + $0x8] sm:$0xff]  ;;  %vm105_vm5 = vcmask 261120  }
   0x4   :  { %v45_v5 = vsel %vm43_vm0, %v34_v3, 0  ;;  %v99_v9 = vpack.c.bf16 %v95_v8, %v94_v7  ;;  %v96_v10 = vld [vmem:[%s1902_s3 + $0x10] sm:$0xff]  ;;  %v97_v11 = vld [vmem:[%s1902_s3 + $0x18] sm:$0xff]  ;;  %v1163_v13 = vld [vmem:[%s1904_s5] ss:$0 sm:$0xff]  ;;  %s1414_s25 = smov 112  }
   0x5   :  { %1185 = vmatpush3.bf16.msra.mxu0 %v45_v5  ;;  %v100_v12 = vpack.c.bf16 %v97_v11, %v96_v10  ;;  %v156_v25 = vld [vmem:[%s1903_s4] sm:$0xff]  ;;  %v157_v26 = vld [vmem:[%s1903_s4 + $0x8] sm:$0xff]  ;;  %v158_v28 = vld [vmem:[%s1903_s4 + $0x10] sm:$0xff]  ;;  %s1415_s28 = smov 116   ;;  %s1416_s29 = smov 124   ;;  %vm285_vm8 = vcmask 25600  }
   0x6   :  { %1198 = vmatprep.subr.bf16.mxu0 %v1412_v2  ;;  %1191 = vmatpush3.bf16.msra.mxu1 %v99_v9  ;;  %v161_v27 = vpack.c.bf16 %v157_v26, %v156_v25  ;;  %v159_v29 = vld [vmem:[%s1903_s4 + $0x18] sm:$0xff]  ;;  %v1165_v31 = vld [vmem:[%s1904_s5 + $0x1] ss:$0 sm:$0xff]  ;;  %v1167_v43 = vld [vmem:[%s1904_s5 + $0x2] ss:$0 sm:$0xff]  ;;  %s1417_s2 = smov 120  }
   0x7   :  { %1192 = vmatprep.subr.bf16.mxu1 %v1412_v2  ;;  %v162_v30 = vpack.c.bf16 %v159_v29, %v158_v28  ;;  %v211_v54 = vld [vmem:[%s1900_s1] sm:$0xff]  ;;  %vm361_vm9 = vcmask 27650   ;;  %vm459_vm10 = vcmask 29700   ;;  %vm556_vm11 = vcmask 31750   ;;  %s1423_s4 = smov 127   ;;  %s1424_s24 = smov 126  }
   0x8   :  { %1187 = vmatmul.mubr.msk.bf16.vlgmr.msra.gmra.mrb[0].mxu0 %vm39_vm2, %v33_v6  ;;  %v1171_v4 = vld [vmem:[%s1904_s5 + $0x7] ss:$0 sm:$0xff]  ;;  %v1560_v26 = vld [vmem:[%s1904_s5 + $0x5] ss:$0 sm:$0xff]  ;;  %s1426_s26 = smov 3   ;;  %s1427_s27 = smov 125  }
   0x9   :  { %1202 = vmatprep.mubr.msk.bf16.mxu0 %vm1413_vm1, %v1412_v2  ;;  %1199 = vmatpush3.bf16.msra.mxu0 %v161_v27  ;;  %s1429_s30 = smov [#allocation2]  }
   0xa   :  { %1193 = vmatpush3.bf16.msra.mxu1 %v100_v12  ;;  %1200 = vmatprep.subr.bf16.mxu0 %v1412_v2  ;;  %s1153_s8 = sshll.u32 %s1429_s30, 4  ;;  %s1154_s8 = int_to_ptr.vmem [resolvable:$true] %s1153_s8 }
   0xb   :  { %p1393_p1 = scmp.lt.s32.totalorder %s1154_s8, %s1154_s8 }
   0xd   :  { %1201 = vmatpush3.bf16.msra.mxu0 %v162_v30 }
  0xdb   :  { %v81_v14 = vpop.f32.mrb[0].mxu0 }
  0xdc   :  { %v82_v15 = vadd.f32 %v1163_v13, %v81_v14  ;;  %v1188_v16 = vpop.f32.mrb[1].mxu0  ;;  %v1419_v14 = vmov 0  }
  0xdd   :  { %v84_v17 = vpop.f32.mrb[2].mxu0  ;;  %1224 = vset.pattern.permute.xlu0 %v1419_v14 }
  0xde   :  { %v90_v18 = vmul.f32 0.1, %v82_v15  ;;  %v85_v19 = vadd.f32 %v1163_v13, %v84_v17  ;;  %v1189_v20 = vpop.f32.mrb[3].mxu0  ;;  %vm88_vm3 = vcmp.gt.f32.partialorder %v82_v15, 0.0  ;;  %v1418_v13 = vmov 1  }
  0xdf   :  { %1225 = vset.pattern.permute.xlu1 %v1418_v13  ;;  %v1420_v20 = vmov 2  }
  0xe0   :  { %vm89_vm4 = vcmp.gt.f32.partialorder %v85_v19, 0.0  ;;  %v91_v21 = vmul.f32 0.1, %v85_v19  ;;  %v92_v22 = vsel %vm88_vm3, %v82_v15, %v90_v18 }
  0xe2   :  { %v93_v23 = vsel %vm89_vm4, %v85_v19, %v91_v21  ;;  %v1421_v21 = vmov 3  }
  0xe3   :  { %v98_v24 = vpack.c.bf16 %v93_v23, %v92_v22  ;;  %v1550_v23 = vld [vmem:[%s1904_s5 + $0x4] ss:$0 sm:$0xff] }
  0xe5   :  { %1195 = vmatmul.mubr.msk.bf16.vlgmr.msra.gmra.mrb[0].mxu1 %vm105_vm5, %v98_v24  ;;  %v1555_v24 = vld [vmem:[%s1904_s5 + $0x3] ss:$0 sm:$0xff] }
 0x1b8   :  { %v143_v32 = vpop.f32.mrb[0].mxu1 }
 0x1b9   :  { %v144_v33 = vadd.f32 %v1165_v31, %v143_v32  ;;  %v1196_v34 = vpop.f32.mrb[1].mxu1 }
 0x1ba   :  { %v146_v35 = vpop.f32.mrb[2].mxu1 }
 0x1bb   :  { %v152_v36 = vmul.f32 0.1, %v144_v33  ;;  %v147_v37 = vadd.f32 %v1165_v31, %v146_v35  ;;  %v1197_v38 = vpop.f32.mrb[3].mxu1  ;;  %vm150_vm6 = vcmp.gt.f32.partialorder %v144_v33, 0.0  ;;  %v1568_v31 = vld [vmem:[%s1904_s5 + $0x6] ss:$0 sm:$0xff] }
 0x1bd   :  { %vm151_vm7 = vcmp.gt.f32.partialorder %v147_v37, 0.0  ;;  %v153_v39 = vmul.f32 0.1, %v147_v37  ;;  %v154_v40 = vsel %vm150_vm6, %v144_v33, %v152_v36 }
 0x1bf   :  { %v155_v41 = vsel %vm151_vm7, %v147_v37, %v153_v39 }
 0x1c0   :  { %v160_v42 = vpack.c.bf16 %v155_v41, %v154_v40 }
 0x1c2   :  { %1203 = vmatmul.mubr.msk.bf16.vlgmr.msra.gmra.mrb[4].mxu0 %vm105_vm5, %v160_v42 }
 0x295   :  { %v204_v44 = vpop.f32.mrb[4].mxu0 }
 0x296   :  { %v205_v45 = vadd.f32 %v1167_v43, %v204_v44  ;;  %v1204_v46 = vpop.f32.mrb[5].mxu0 }
 0x297   :  { %v207_v47 = vpop.f32.mrb[6].mxu0 }
 0x298   :  { %v219_v48 = vsub.f32 0.0, %v205_v45  ;;  %v1515_v49 = vadd.f32 %v1167_v43, %v207_v47  ;;  %v1205_v50 = vpop.f32.mrb[7].mxu0  ;;  %v235_v53 = vmul.f32 0.5, %v205_v45  ;;  %v213_v55 = vsub.f32 %v211_v54, %v205_v45 }
 0x29a   :  { %v221_v51 = vmul.f32 1.442695, %v219_v48  ;;  %v215_v56 = vmul.f32 %v213_v55, %v213_v55 }
 0x29c   :  { %1278 = vpow2.f32 %v221_v51  ;;  %v217_v58 = vmul.f32 -0.5, %v215_v56 }
 0x2a6   :  { %v1279_v52 = vpop.eup %1278 }
 0x2a7   :  { %227 = vrot.lane.b32.xlu0 %v1279_v52, %s1414_s25 }
 0x2ab   :  { %239 = vrot.lane.b32.xlu0 %v235_v53, %s1414_s25 }
 0x319   :  { %v228_v57 = vpop.permute.xlu0 %227 }
 0x31a   :  { %v233_v59 = vmul.f32 %v228_v57, %v217_v58 }
 0x31d   :  { %v240_v60 = vpop.permute.xlu0 %239 }
 0x31e   :  { %v245_v61 = vsub.f32 %v233_v59, %v240_v60 }
 0x320   :  { %v1169_v62 = vadd.f32 -0.9189385, %v245_v61 }
 0x322   :  { %267 = vrot.lane.b32.xlu0 %v1169_v62, %s1415_s28  ;;  %251 = vrot.lane.b32.xlu1 %v1169_v62, %s1416_s29 }
 0x326   :  { %259 = vrot.lane.b32.xlu1 %v1169_v62, %s1417_s2 }
 0x394   :  { %v252_v63 = vpop.permute.xlu1 %251  ;;  %v268_v3 = vpop.permute.xlu0 %267 }
 0x395   :  { %v257_v0 = vadd.f32 %v1169_v62, %v252_v63 }
 0x398   :  { %v260_v1 = vpop.permute.xlu1 %259 }
 0x399   :  { %v265_v2 = vadd.f32 %v260_v1, %v257_v0 }
 0x39b   :  { %v1528_v5 = vadd.f32 %v268_v3, %v265_v2 }
 0x39d   :  { %v1531_v6 = vadd.f32 %v1171_v4, %v1528_v5 }
 0x39f   :  { %v286_v7 = vsel %vm285_vm8, %v1531_v6, -inf }
 0x3a0   :  { %287 = vmax.xlane.f32.xlu1 %v286_v7 }
 0x42d   :  { %v288_v8 = vpop.xlane.xlu1 %287 }
 0x42e   :  { %v289_v9 = vsub.f32 %v1531_v6, %v288_v8 }
 0x430   :  { %v290_v10 = vmul.f32 1.442695, %v289_v9 }
 0x432   :  { %1280 = vpow2.f32 %v290_v10 }
 0x43c   :  { %v1281_v11 = vpop.eup %1280 }
 0x43d   :  { %v292_v12 = vsel %vm285_vm8, %v1281_v11, 0.0 }
 0x43e   :  { %293 = vadd.xlane.f32.xlu0 %v292_v12 }
 0x4cb   :  { %v294_v15 = vpop.xlane.xlu0 %293 }
 0x4cc   :  { %1282 = vlog2.f32 %v294_v15 }
 0x4d6   :  { %v1283_v16 = vpop.eup %1282 }
 0x4d7   :  { %v296_v17 = vmul.f32 0.6931472, %v1283_v16 }
 0x4d9   :  { %v1539_v18 = vadd.f32 %v296_v17, %v288_v8 }
 0x4db   :  { %v298_v19 = vsub.f32 %v1531_v6, %v1539_v18 }
 0x4dd   :  { %310 = vperm.xlu1 %1225, %v298_v19   ;;  %301 = vperm.xlu0 %1224, %v298_v19  }
 0x4e1   :  { %1226 = vset.pattern.permute.xlu1 %v1420_v20  ;;  %1229 = vset.pattern.permute.xlu0 %v1418_v13 }
 0x4e2   :  { %319 = vperm.xlu1 %1226, %v298_v19  }
 0x4e6   :  { %1227 = vset.pattern.permute.xlu1 %v1421_v21 }
 0x4e7   :  { %328 = vperm.xlu1 %1227, %v298_v19  }
 0x4eb   :  { %1228 = vset.pattern.permute.xlu1 %v1419_v14 }
 0x55c   :  { %v311_v22 = vpop.permute.xlu1 %310  ;;  %v302_v25 = vpop.permute.xlu0 %301 }
 0x55d   :  { %v317_v27 = vadd.f32 %v1550_v23, %v311_v22  ;;  %v308_v28 = vadd.f32 %v1555_v24, %v302_v25 }
 0x55f   :  { %v336_v32 = vmax.f32 %v308_v28, %v317_v27 }
 0x561   :  { %v320_v29 = vpop.permute.xlu1 %319 }
 0x562   :  { %v326_v30 = vadd.f32 %v1560_v26, %v320_v29 }
 0x564   :  { %v337_v34 = vmax.f32 %v336_v32, %v326_v30 }
 0x566   :  { %v329_v33 = vpop.permute.xlu1 %328 }
 0x567   :  { %v335_v35 = vadd.f32 %v1568_v31, %v329_v33 }
 0x569   :  { %v338_v36 = vmax.f32 %v337_v34, %v335_v35 }
 0x56b   :  { %v339_v37 = vsub.f32 %v308_v28, %v338_v36  ;;  %v342_v38 = vsub.f32 %v317_v27, %v338_v36  ;;  %v346_v39 = vsub.f32 %v326_v30, %v338_v36  ;;  %v350_v40 = vsub.f32 %v335_v35, %v338_v36 }
 0x56d   :  { %v340_v41 = vmul.f32 1.442695, %v339_v37  ;;  %v343_v42 = vmul.f32 1.442695, %v342_v38  ;;  %v347_v43 = vmul.f32 1.442695, %v346_v39 }
 0x56e   :  { %v351_v44 = vmul.f32 1.442695, %v350_v40 }
 0x56f   :  { %1284 = vpow2.f32 %v340_v41 }
 0x570   :  { %1286 = vpow2.f32 %v343_v42 }
 0x571   :  { %1288 = vpow2.f32 %v347_v43 }
 0x572   :  { %1290 = vpow2.f32 %v351_v44 }
 0x579   :  { %v1285_v45 = vpop.eup %1284 }
 0x57a   :  { %v1287_v46 = vpop.eup %1286 }
 0x57b   :  { %v345_v47 = vadd.f32 %v1287_v46, %v1285_v45  ;;  %v1289_v48 = vpop.eup %1288 }
 0x57c   :  { %v1291_v51 = vpop.eup %1290 }
 0x57d   :  { %v349_v50 = vadd.f32 %v1289_v48, %v345_v47 }
 0x57f   :  { %v353_v52 = vadd.f32 %v1291_v51, %v349_v50 }
 0x581   :  { %1292 = vlog2.f32 %v353_v52 }
 0x58b   :  { %v1293_v53 = vpop.eup %1292 }
 0x58c   :  { %v355_v54 = vmul.f32 0.6931472, %v1293_v53 }
 0x58e   :  { %v356_v55 = vadd.f32 %v355_v54, %v338_v36 }
 0x590   :  { %v358_v56 = vrot.slane %v356_v55, 6 }
 0x592   :  { %v360_v57 = vadd.f32 %v358_v56, %v1528_v5 }
 0x594   :  { %v362_v58 = vsel %vm361_vm9, %v360_v57, -inf }
 0x595   :  { %363 = vmax.xlane.f32.xlu1 %v362_v58 }
 0x622   :  { %v364_v59 = vpop.xlane.xlu1 %363 }
 0x623   :  { %v365_v60 = vsub.f32 %v360_v57, %v364_v59 }
 0x625   :  { %v366_v61 = vmul.f32 1.442695, %v365_v60 }
 0x627   :  { %1294 = vpow2.f32 %v366_v61 }
 0x631   :  { %v1295_v62 = vpop.eup %1294 }
 0x632   :  { %v368_v63 = vsel %vm361_vm9, %v1295_v62, 0.0 }
 0x633   :  { %369 = vadd.xlane.f32.xlu0 %v368_v63 }
 0x6c0   :  { %v370_v0 = vpop.xlane.xlu0 %369 }
 0x6c1   :  { %1296 = vlog2.f32 %v370_v0 }
 0x6cb   :  { %v1297_v1 = vpop.eup %1296 }
 0x6cc   :  { %v372_v2 = vmul.f32 0.6931472, %v1297_v1 }
 0x6ce   :  { %v1574_v3 = vadd.f32 %v372_v2, %v364_v59 }
 0x6d0   :  { %v374_v4 = vsub.f32 %v360_v57, %v1574_v3  ;;  %v376_v56 = vrot.slane %v1574_v3, 2 }
 0x6d2   :  { %420 = vperm.xlu0 %1229, %v374_v4   ;;  %415 = vperm.xlu1 %1228, %v374_v4   ;;  %v378_v59 = vadd.f32 %v376_v56, %v1539_v18 }
 0x6d6   :  { %1230 = vset.pattern.permute.xlu1 %v1420_v20  ;;  %1236 = vset.pattern.permute.xlu0 %v1419_v14 }
 0x6d7   :  { %425 = vperm.xlu1 %1230, %v374_v4  }
 0x6db   :  { %1231 = vset.pattern.permute.xlu1 %v1421_v21 }
 0x6dc   :  { %430 = vperm.xlu1 %1231, %v374_v4  }
 0x6e0   :  { %1232 = vset.pattern.permute.xlu1 %v1419_v14 }
 0x751   :  { %v416_v7 = vpop.permute.xlu1 %415  ;;  %v421_v8 = vpop.permute.xlu0 %420 }
 0x752   :  { %v423_v9 = vadd.f32 %v1550_v23, %v421_v8  ;;  %v418_v10 = vadd.f32 %v1555_v24, %v416_v7 }
 0x754   :  { %v434_v15 = vmax.f32 %v418_v10, %v423_v9 }
 0x756   :  { %v426_v11 = vpop.permute.xlu1 %425 }
 0x757   :  { %v428_v12 = vadd.f32 %v1560_v26, %v426_v11 }
 0x759   :  { %v435_v17 = vmax.f32 %v434_v15, %v428_v12 }
 0x75b   :  { %v431_v16 = vpop.permute.xlu1 %430 }
 0x75c   :  { %v433_v19 = vadd.f32 %v1568_v31, %v431_v16 }
 0x75e   :  { %v436_v22 = vmax.f32 %v435_v17, %v433_v19 }
 0x760   :  { %v437_v25 = vsub.f32 %v418_v10, %v436_v22  ;;  %v440_v27 = vsub.f32 %v423_v9, %v436_v22  ;;  %v444_v28 = vsub.f32 %v428_v12, %v436_v22  ;;  %v448_v29 = vsub.f32 %v433_v19, %v436_v22 }
 0x762   :  { %v438_v30 = vmul.f32 1.442695, %v437_v25  ;;  %v441_v32 = vmul.f32 1.442695, %v440_v27  ;;  %v445_v33 = vmul.f32 1.442695, %v444_v28 }
 0x763   :  { %v449_v34 = vmul.f32 1.442695, %v448_v29 }
 0x764   :  { %1298 = vpow2.f32 %v438_v30 }
 0x765   :  { %1300 = vpow2.f32 %v441_v32 }
 0x766   :  { %1302 = vpow2.f32 %v445_v33 }
 0x767   :  { %1304 = vpow2.f32 %v449_v34 }
 0x76e   :  { %v1299_v35 = vpop.eup %1298 }
 0x76f   :  { %v1301_v36 = vpop.eup %1300 }
 0x770   :  { %v443_v37 = vadd.f32 %v1301_v36, %v1299_v35  ;;  %v1303_v38 = vpop.eup %1302 }
 0x771   :  { %v1305_v40 = vpop.eup %1304 }
 0x772   :  { %v447_v39 = vadd.f32 %v1303_v38, %v443_v37 }
 0x774   :  { %v451_v41 = vadd.f32 %v1305_v40, %v447_v39 }
 0x776   :  { %1306 = vlog2.f32 %v451_v41  ;;  %v220_v41 = vsub.f32 0.0, %v1515_v49 }
 0x780   :  { %v1307_v42 = vpop.eup %1306 }
 0x781   :  { %v453_v43 = vmul.f32 0.6931472, %v1307_v42  ;;  %v223_v42 = vmul.f32 1.442695, %v220_v41 }
 0x783   :  { %v454_v44 = vadd.f32 %v453_v43, %v436_v22 }
 0x785   :  { %v456_v45 = vrot.slane %v454_v44, 6  ;;  %v236_v44 = vmul.f32 0.5, %v1515_v49 }
 0x787   :  { %v458_v46 = vadd.f32 %v456_v45, %v1528_v5 }
 0x789   :  { %v460_v47 = vsel %vm459_vm10, %v458_v46, -inf }
 0x78a   :  { %461 = vmax.xlane.f32.xlu1 %v460_v47 }
 0x817   :  { %v462_v48 = vpop.xlane.xlu1 %461 }
 0x818   :  { %v463_v50 = vsub.f32 %v458_v46, %v462_v48 }
 0x81a   :  { %v464_v51 = vmul.f32 1.442695, %v463_v50 }
 0x81c   :  { %1308 = vpow2.f32 %v464_v51 }
 0x826   :  { %v1309_v52 = vpop.eup %1308 }
 0x827   :  { %v466_v53 = vsel %vm459_vm10, %v1309_v52, 0.0  ;;  %v212_v52 = vld [vmem:[%s1900_s1 + $0x8] sm:$0xff] }
 0x828   :  { %467 = vadd.xlane.f32.xlu0 %v466_v53  ;;  %v214_v53 = vsub.f32 %v212_v52, %v1515_v49 }
 0x8b5   :  { %v468_v54 = vpop.xlane.xlu0 %467 }
 0x8b6   :  { %1310 = vlog2.f32 %v468_v54 }
 0x8c0   :  { %v1311_v55 = vpop.eup %1310 }
 0x8c1   :  { %v470_v57 = vmul.f32 0.6931472, %v1311_v55  ;;  %v216_v55 = vmul.f32 %v214_v53, %v214_v53 }
 0x8c3   :  { %v471_v58 = vadd.f32 %v470_v57, %v462_v48  ;;  %v218_v57 = vmul.f32 -0.5, %v216_v55 }
 0x8c5   :  { %v472_v60 = vsub.f32 %v458_v46, %v471_v58  ;;  %v474_v61 = vrot.slane %v471_v58, 4 }
 0x8c7   :  { %v1590_v62 = vadd.f32 %v474_v61, %v378_v59  ;;  %512 = vperm.xlu1 %1232, %v472_v60  }
 0x8cb   :  { %1233 = vset.pattern.permute.xlu1 %v1418_v13 }
 0x8cc   :  { %517 = vperm.xlu1 %1233, %v472_v60  }
 0x8d0   :  { %1234 = vset.pattern.permute.xlu1 %v1420_v20 }
 0x8d1   :  { %522 = vperm.xlu1 %1234, %v472_v60  }
 0x8d5   :  { %1235 = vset.pattern.permute.xlu1 %v1421_v21 }
 0x8d6   :  { %527 = vperm.xlu1 %1235, %v472_v60  }
 0x8da   :  { %1238 = vset.pattern.permute.xlu1 %v1420_v20 }
 0x946   :  { %v513_v63 = vpop.permute.xlu1 %512 }
 0x947   :  { %v515_v2 = vadd.f32 %v1555_v24, %v513_v63 }
 0x94b   :  { %v518_v0 = vpop.permute.xlu1 %517 }
 0x94c   :  { %v520_v18 = vadd.f32 %v1550_v23, %v518_v0 }
 0x94e   :  { %v531_v4 = vmax.f32 %v515_v2, %v520_v18 }
 0x950   :  { %v523_v1 = vpop.permute.xlu1 %522 }
 0x951   :  { %v525_v3 = vadd.f32 %v1560_v26, %v523_v1 }
 0x953   :  { %v532_v8 = vmax.f32 %v531_v4, %v525_v3 }
 0x955   :  { %v528_v7 = vpop.permute.xlu1 %527 }
 0x956   :  { %v530_v9 = vadd.f32 %v1568_v31, %v528_v7 }
 0x958   :  { %v533_v10 = vmax.f32 %v532_v8, %v530_v9 }
 0x95a   :  { %v534_v11 = vsub.f32 %v515_v2, %v533_v10  ;;  %v537_v12 = vsub.f32 %v520_v18, %v533_v10  ;;  %v541_v15 = vsub.f32 %v525_v3, %v533_v10  ;;  %v545_v16 = vsub.f32 %v530_v9, %v533_v10 }
 0x95c   :  { %v535_v17 = vmul.f32 1.442695, %v534_v11  ;;  %v538_v19 = vmul.f32 1.442695, %v537_v12  ;;  %v542_v22 = vmul.f32 1.442695, %v541_v15 }
 0x95d   :  { %v546_v25 = vmul.f32 1.442695, %v545_v16 }
 0x95e   :  { %1312 = vpow2.f32 %v535_v17 }
 0x95f   :  { %1314 = vpow2.f32 %v538_v19 }
 0x960   :  { %1316 = vpow2.f32 %v542_v22 }
 0x961   :  { %1318 = vpow2.f32 %v546_v25 }
 0x968   :  { %v1313_v27 = vpop.eup %1312 }
 0x969   :  { %v1315_v28 = vpop.eup %1314 }
 0x96a   :  { %v540_v29 = vadd.f32 %v1315_v28, %v1313_v27  ;;  %v1317_v30 = vpop.eup %1316 }
 0x96b   :  { %v1319_v33 = vpop.eup %1318 }
 0x96c   :  { %v544_v32 = vadd.f32 %v1317_v30, %v540_v29 }
 0x96e   :  { %v548_v34 = vadd.f32 %v1319_v33, %v544_v32 }
 0x970   :  { %1320 = vlog2.f32 %v548_v34 }
 0x971   :  { %1322 = vpow2.f32 %v223_v42 }
 0x97a   :  { %v1321_v35 = vpop.eup %1320 }
 0x97b   :  { %v550_v36 = vmul.f32 0.6931472, %v1321_v35  ;;  %v1323_v43 = vpop.eup %1322 }
 0x97d   :  { %v551_v37 = vadd.f32 %v550_v36, %v533_v10 }
 0x97f   :  { %v553_v38 = vrot.slane %v551_v37, 6 }
 0x981   :  { %v555_v39 = vadd.f32 %v553_v38, %v1528_v5 }
 0x983   :  { %v557_v40 = vsel %vm556_vm11, %v555_v39, -inf }
 0x984   :  { %558 = vmax.xlane.f32.xlu0 %v557_v40 }
 0x99a   :  { %229 = vrot.lane.b32.xlu0 %v1323_v43, %s1414_s25 }
 0x99e   :  { %241 = vrot.lane.b32.xlu0 %v236_v44, %s1414_s25  ;;  %s1425_s25 = smov 2  }
 0xa11   :  { %v559_v45 = vpop.xlane.xlu0 %558 }
 0xa12   :  { %v560_v46 = vsub.f32 %v555_v39, %v559_v45 }
 0xa14   :  { %v561_v47 = vmul.f32 1.442695, %v560_v46 }
 0xa15   :  { %v230_v54 = vpop.permute.xlu0 %229 }
 0xa16   :  { %1324 = vpow2.f32 %v561_v47  ;;  %v234_v60 = vmul.f32 %v230_v54, %v218_v57 }
 0xa19   :  { %v242_v59 = vpop.permute.xlu0 %241 }
 0xa1a   :  { %v246_v63 = vsub.f32 %v234_v60, %v242_v59 }
 0xa1c   :  { %v1170_v2 = vadd.f32 -0.9189385, %v246_v63 }
 0xa20   :  { %v1325_v48 = vpop.eup %1324 }
 0xa21   :  { %v563_v50 = vsel %vm556_vm11, %v1325_v48, 0.0 }
 0xa22   :  { %564 = vadd.xlane.f32.xlu1 %v563_v50 }
 0xaaf   :  { %v565_v51 = vpop.xlane.xlu1 %564 }
 0xab0   :  { %1326 = vlog2.f32 %v565_v51 }
 0xaba   :  { %v1327_v56 = vpop.eup %1326 }
 0xabb   :  { %v567_v58 = vmul.f32 0.6931472, %v1327_v56 }
 0xabd   :  { %v568_v61 = vadd.f32 %v567_v58, %v559_v45 }
 0xabf   :  { %v571_v0 = vrot.slane %v568_v61, 6  ;;  %v569_v18 = vsub.f32 %v555_v39, %v568_v61 }
 0xac1   :  { %619 = vperm.xlu1 %1238, %v569_v18   ;;  %609 = vperm.xlu0 %1236, %v569_v18   ;;  %v1612_v1 = vadd.f32 %v571_v0, %v1590_v62 }
 0xac5   :  { %1237 = vset.pattern.permute.xlu0 %v1418_v13  ;;  %261 = vrot.lane.b32.xlu1 %v1170_v2, %s1417_s2 }
 0xac6   :  { %614 = vperm.xlu0 %1237, %v569_v18   ;;  %1241 = vset.pattern.permute.xlu1 %v1418_v13 }
 0xaca   :  { %1239 = vset.pattern.permute.xlu0 %v1421_v21 }
 0xacb   :  { %624 = vperm.xlu0 %1239, %v569_v18  }
 0xacf   :  { %253 = vrot.lane.b32.xlu0 %v1170_v2, %s1416_s29 }
 0xad0   :  { %1240 = vset.pattern.permute.xlu0 %v1419_v14 }
 0xad3   :  { %269 = vrot.lane.b32.xlu0 %v1170_v2, %s1415_s28  ;;  %s1428_s28 = smov 4  }
 0xb40   :  { %v610_v49 = vpop.permute.xlu0 %609  ;;  %v620_v62 = vpop.permute.xlu1 %619 }
 0xb41   :  { %v612_v4 = vadd.f32 %v1555_v24, %v610_v49  ;;  %v622_v8 = vadd.f32 %v1560_v26, %v620_v62 }
 0xb44   :  { %v262_v41 = vpop.permute.xlu1 %261 }
 0xb45   :  { %v615_v3 = vpop.permute.xlu0 %614 }
 0xb46   :  { %v617_v7 = vadd.f32 %v1550_v23, %v615_v3 }
 0xb48   :  { %v628_v9 = vmax.f32 %v612_v4, %v617_v7 }
 0xb4a   :  { %v629_v10 = vmax.f32 %v628_v9, %v622_v8  ;;  %v625_v11 = vpop.permute.xlu0 %624 }
 0xb4b   :  { %v627_v12 = vadd.f32 %v1568_v31, %v625_v11 }
 0xb4d   :  { %v630_v15 = vmax.f32 %v629_v10, %v627_v12 }
 0xb4e   :  { %v254_v38 = vpop.permute.xlu0 %253 }
 0xb4f   :  { %v631_v16 = vsub.f32 %v612_v4, %v630_v15  ;;  %v634_v17 = vsub.f32 %v617_v7, %v630_v15  ;;  %v638_v19 = vsub.f32 %v622_v8, %v630_v15  ;;  %v642_v22 = vsub.f32 %v627_v12, %v630_v15 }
 0xb50   :  { %v258_v39 = vadd.f32 %v1170_v2, %v254_v38 }
 0xb51   :  { %v632_v25 = vmul.f32 1.442695, %v631_v16  ;;  %v635_v27 = vmul.f32 1.442695, %v634_v17  ;;  %v639_v28 = vmul.f32 1.442695, %v638_v19 }
 0xb52   :  { %v643_v29 = vmul.f32 1.442695, %v642_v22  ;;  %v266_v42 = vadd.f32 %v262_v41, %v258_v39  ;;  %v270_v44 = vpop.permute.xlu0 %269  ;;  %v410_v41 = vrot.slane %v1528_v5, 2 }
 0xb53   :  { %1328 = vpow2.f32 %v632_v25 }
 0xb54   :  { %1330 = vpow2.f32 %v635_v27  ;;  %v1625_v46 = vadd.f32 %v270_v44, %v266_v42 }
 0xb55   :  { %1332 = vpow2.f32 %v639_v28 }
 0xb56   :  { %1334 = vpow2.f32 %v643_v29 }
 0xb5d   :  { %v1329_v30 = vpop.eup %1328 }
 0xb5e   :  { %v1331_v32 = vpop.eup %1330 }
 0xb5f   :  { %v637_v33 = vadd.f32 %v1331_v32, %v1329_v30  ;;  %v1333_v34 = vpop.eup %1332 }
 0xb60   :  { %v1335_v36 = vpop.eup %1334 }
 0xb61   :  { %v641_v35 = vadd.f32 %v1333_v34, %v637_v33 }
 0xb63   :  { %v645_v37 = vadd.f32 %v1335_v36, %v641_v35 }
 0xb65   :  { %1336 = vlog2.f32 %v645_v37 }
 0xb6f   :  { %v1337_v40 = vpop.eup %1336 }
 0xb70   :  { %v647_v43 = vmul.f32 0.6931472, %v1337_v40 }
 0xb72   :  { %v648_v45 = vadd.f32 %v647_v43, %v630_v15 }
 0xb74   :  { %v650_v47 = vrot.slane %v648_v45, 6 }
 0xb76   :  { %v652_v48 = vadd.f32 %v650_v47, %v1625_v46 }
 0xb78   :  { %v653_v50 = vsel %vm285_vm8, %v652_v48, -inf }
 0xb79   :  { %654 = vmax.xlane.f32.xlu1 %v653_v50 }
 0xc06   :  { %v655_v51 = vpop.xlane.xlu1 %654 }
 0xc07   :  { %v656_v52 = vsub.f32 %v652_v48, %v655_v51 }
 0xc09   :  { %v657_v53 = vmul.f32 1.442695, %v656_v52 }
 0xc0b   :  { %1338 = vpow2.f32 %v657_v53 }
 0xc15   :  { %v1339_v54 = vpop.eup %1338 }
 0xc16   :  { %v659_v55 = vsel %vm285_vm8, %v1339_v54, 0.0 }
 0xc17   :  { %660 = vadd.xlane.f32.xlu0 %v659_v55 }
 0xca4   :  { %v661_v56 = vpop.xlane.xlu0 %660 }
 0xca5   :  { %1340 = vlog2.f32 %v661_v56 }
 0xcaf   :  { %v1341_v57 = vpop.eup %1340 }
 0xcb0   :  { %v663_v58 = vmul.f32 0.6931472, %v1341_v57 }
 0xcb2   :  { %v664_v59 = vadd.f32 %v663_v58, %v655_v51 }
 0xcb4   :  { %v665_v60 = vsub.f32 %v652_v48, %v664_v59  ;;  %v1631_v61 = vadd.f32 %v664_v59, %v1612_v1 }
 0xcb6   :  { %705 = vperm.xlu1 %1241, %v665_v60   ;;  %700 = vperm.xlu0 %1240, %v665_v60  }
 0xcba   :  { %1242 = vset.pattern.permute.xlu1 %v1420_v20 }
 0xcbb   :  { %710 = vperm.xlu1 %1242, %v665_v60  }
 0xcbf   :  { %1243 = vset.pattern.permute.xlu1 %v1421_v21 }
 0xcc0   :  { %715 = vperm.xlu1 %1243, %v665_v60  }
 0xcc4   :  { %1244 = vset.pattern.permute.xlu1 %v1419_v14 }
 0xcc5   :  { %381 = vperm.xlu1 %1244, %v1531_v6  }
 0xcc9   :  { %1245 = vset.pattern.permute.xlu1 %v1418_v13 }
 0xcca   :  { %386 = vperm.xlu1 %1245, %v1531_v6  }
 0xcce   :  { %1246 = vset.pattern.permute.xlu1 %v1420_v20 }
 0xccf   :  { %391 = vperm.xlu1 %1246, %v1531_v6  }
 0xcd3   :  { %1247 = vset.pattern.permute.xlu1 %v1421_v21 }
 0xcd4   :  { %396 = vperm.xlu1 %1247, %v1531_v6  }
 0xcd8   :  { %1251 = vset.pattern.permute.xlu1 %v1419_v14 }
 0xd35   :  { %v706_v63 = vpop.permute.xlu1 %705  ;;  %v701_v0 = vpop.permute.xlu0 %700 }
 0xd36   :  { %v708_v18 = vadd.f32 %v1550_v23, %v706_v63  ;;  %v703_v1 = vadd.f32 %v1555_v24, %v701_v0 }
 0xd38   :  { %v719_v62 = vmax.f32 %v703_v1, %v708_v18 }
 0xd3a   :  { %v711_v2 = vpop.permute.xlu1 %710 }
 0xd3b   :  { %v713_v49 = vadd.f32 %v1560_v26, %v711_v2 }
 0xd3d   :  { %v720_v4 = vmax.f32 %v719_v62, %v713_v49 }
 0xd3f   :  { %v716_v3 = vpop.permute.xlu1 %715 }
 0xd40   :  { %v718_v7 = vadd.f32 %v1568_v31, %v716_v3  ;;  %v507_v3 = vrot.slane %v1528_v5, 4 }
 0xd42   :  { %v721_v8 = vmax.f32 %v720_v4, %v718_v7 }
 0xd44   :  { %v722_v9 = vsub.f32 %v703_v1, %v721_v8  ;;  %v725_v10 = vsub.f32 %v708_v18, %v721_v8  ;;  %v729_v6 = vsub.f32 %v713_v49, %v721_v8  ;;  %v382_v11 = vpop.permute.xlu1 %381  ;;  %v733_v12 = vsub.f32 %v718_v7, %v721_v8 }
 0xd45   :  { %v384_v25 = vadd.f32 %v1555_v24, %v382_v11 }
 0xd46   :  { %v723_v15 = vmul.f32 1.442695, %v722_v9  ;;  %v726_v16 = vmul.f32 1.442695, %v725_v10  ;;  %v730_v17 = vmul.f32 1.442695, %v729_v6 }
 0xd47   :  { %v734_v19 = vmul.f32 1.442695, %v733_v12 }
 0xd48   :  { %1342 = vpow2.f32 %v723_v15 }
 0xd49   :  { %1344 = vpow2.f32 %v726_v16  ;;  %v387_v22 = vpop.permute.xlu1 %386 }
 0xd4a   :  { %v389_v27 = vadd.f32 %v1550_v23, %v387_v22  ;;  %1346 = vpow2.f32 %v730_v17 }
 0xd4b   :  { %1348 = vpow2.f32 %v734_v19 }
 0xd4c   :  { %vm400_vm12 = vcmp.gt.f32.partialorder %v389_v27, %v384_v25  ;;  %v402_v29 = vmax.f32 %v384_v25, %v389_v27 }
 0xd4d   :  { %v401_v32 = vsel %vm400_vm12, 1, %v1419_v14 }
 0xd4e   :  { %v392_v28 = vpop.permute.xlu1 %391 }
 0xd4f   :  { %v394_v30 = vadd.f32 %v1560_v26, %v392_v28 }
 0xd51   :  { %vm403_vm13 = vcmp.gt.f32.partialorder %v394_v30, %v402_v29  ;;  %v405_v37 = vmax.f32 %v402_v29, %v394_v30 }
 0xd52   :  { %v1343_v33 = vpop.eup %1342  ;;  %v404_v34 = vsel %vm403_vm13, 2, %v401_v32 }
 0xd53   :  { %v1345_v35 = vpop.eup %1344  ;;  %v397_v36 = vpop.permute.xlu1 %396 }
 0xd54   :  { %v399_v38 = vadd.f32 %v1568_v31, %v397_v36  ;;  %v728_v39 = vadd.f32 %v1345_v35, %v1343_v33  ;;  %v1347_v40 = vpop.eup %1346  ;;  %v604_v36 = vrot.slane %v1528_v5, 6 }
 0xd55   :  { %v1349_v44 = vpop.eup %1348 }
 0xd56   :  { %vm406_vm14 = vcmp.gt.f32.partialorder %v399_v38, %v405_v37  ;;  %v408_v42 = vmax.f32 %v405_v37, %v399_v38  ;;  %v732_v43 = vadd.f32 %v1347_v40, %v728_v39 }
 0xd57   :  { %v1654_v45 = vsel %vm406_vm14, 3, %v404_v34 }
 0xd58   :  { %v412_v47 = vadd.f32 %v410_v41, %v408_v42  ;;  %v736_v48 = vadd.f32 %v1349_v44, %v732_v43 }
 0xd5a   :  { %479 = vperm.xlu0 %1240, %v412_v47   ;;  %1350 = vlog2.f32 %v736_v48 }
 0xd5e   :  { %1248 = vset.pattern.permute.xlu0 %v1418_v13 }
 0xd5f   :  { %484 = vperm.xlu0 %1248, %v412_v47  }
 0xd63   :  { %1249 = vset.pattern.permute.xlu0 %v1420_v20 }
 0xd64   :  { %v1351_v50 = vpop.eup %1350  ;;  %489 = vperm.xlu0 %1249, %v412_v47  }
 0xd65   :  { %v738_v51 = vmul.f32 0.6931472, %v1351_v50 }
 0xd67   :  { %v739_v52 = vadd.f32 %v738_v51, %v721_v8 }
 0xd68   :  { %1250 = vset.pattern.permute.xlu0 %v1421_v21 }
 0xd69   :  { %494 = vperm.xlu0 %1250, %v412_v47   ;;  %v741_v53 = vrot.slane %v739_v52, 6 }
 0xd6b   :  { %v1660_v54 = vadd.f32 %v741_v53, %v1625_v46 }
 0xd6d   :  { %v744_v55 = vsel %vm361_vm9, %v1660_v54, -inf }
 0xd6e   :  { %745 = vmax.xlane.f32.xlu1 %v744_v55 }
 0xdd9   :  { %v480_v56 = vpop.permute.xlu0 %479 }
 0xdda   :  { %v482_v58 = vadd.f32 %v1555_v24, %v480_v56 }
 0xdde   :  { %v485_v57 = vpop.permute.xlu0 %484 }
 0xddf   :  { %v487_v59 = vadd.f32 %v1550_v23, %v485_v57 }
 0xde1   :  { %vm498_vm15 = vcmp.gt.f32.partialorder %v487_v59, %v482_v58  ;;  %v500_v63 = vmax.f32 %v482_v58, %v487_v59 }
 0xde2   :  { %v499_v18 = vsel %vm498_vm15, 1, %v1419_v14 }
 0xde3   :  { %v490_v60 = vpop.permute.xlu0 %489 }
 0xde4   :  { %v492_v0 = vadd.f32 %v1560_v26, %v490_v60 }
 0xde6   :  { %vm501_vm0 = vcmp.gt.f32.partialorder %v492_v0, %v500_v63  ;;  %v503_v49 = vmax.f32 %v500_v63, %v492_v0 }
 0xde7   :  { %v502_v1 = vsel %vm501_vm0, 2, %v499_v18 }
 0xde8   :  { %v495_v2 = vpop.permute.xlu0 %494 }
 0xde9   :  { %v497_v62 = vadd.f32 %v1568_v31, %v495_v2 }
 0xdeb   :  { %vm504_vm1 = vcmp.gt.f32.partialorder %v497_v62, %v503_v49  ;;  %v506_v4 = vmax.f32 %v503_v49, %v497_v62 }
 0xdec   :  { %v1670_v7 = vsel %vm504_vm1, 3, %v502_v1 }
 0xded   :  { %v509_v8 = vadd.f32 %v507_v3, %v506_v4 }
 0xdef   :  { %576 = vperm.xlu1 %1251, %v509_v8  }
 0xdf3   :  { %1252 = vset.pattern.permute.xlu1 %v1418_v13 }
 0xdf4   :  { %581 = vperm.xlu1 %1252, %v509_v8  }
 0xdf8   :  { %1253 = vset.pattern.permute.xlu1 %v1420_v20 }
 0xdf9   :  { %586 = vperm.xlu1 %1253, %v509_v8  }
 0xdfb   :  { %v746_v9 = vpop.xlane.xlu1 %745 }
 0xdfc   :  { %v747_v10 = vsub.f32 %v1660_v54, %v746_v9 }
 0xdfd   :  { %1254 = vset.pattern.permute.xlu1 %v1419_v14 }
 0xdfe   :  { %v748_v6 = vmul.f32 1.442695, %v747_v10 }
 0xe00   :  { %1352 = vpow2.f32 %v748_v6 }
 0xe0a   :  { %v1353_v11 = vpop.eup %1352 }
 0xe0b   :  { %v750_v12 = vsel %vm361_vm9, %v1353_v11, 0.0 }
 0xe0c   :  { %751 = vadd.xlane.f32.xlu0 %v750_v12 }
 0xe22   :  { %591 = vperm.xlu0 %1250, %v509_v8  }
 0xe26   :  { %1256 = vset.pattern.permute.xlu0 %v1420_v20 }
 0xe6e   :  { %v577_v15 = vpop.permute.xlu1 %576 }
 0xe6f   :  { %v579_v17 = vadd.f32 %v1555_v24, %v577_v15 }
 0xe73   :  { %v582_v16 = vpop.permute.xlu1 %581 }
 0xe74   :  { %v584_v19 = vadd.f32 %v1550_v23, %v582_v16 }
 0xe76   :  { %vm595_vm3 = vcmp.gt.f32.partialorder %v584_v19, %v579_v17  ;;  %v597_v25 = vmax.f32 %v579_v17, %v584_v19 }
 0xe77   :  { %v596_v28 = vsel %vm595_vm3, 1, %v1419_v14 }
 0xe78   :  { %v587_v22 = vpop.permute.xlu1 %586 }
 0xe79   :  { %v589_v27 = vadd.f32 %v1560_v26, %v587_v22 }
 0xe7b   :  { %vm598_vm4 = vcmp.gt.f32.partialorder %v589_v27, %v597_v25  ;;  %v600_v33 = vmax.f32 %v597_v25, %v589_v27 }
 0xe7c   :  { %v599_v29 = vsel %vm598_vm4, 2, %v596_v28 }
 0xe99   :  { %v752_v30 = vpop.xlane.xlu0 %751 }
 0xe9a   :  { %1354 = vlog2.f32 %v752_v30 }
 0xea1   :  { %v592_v32 = vpop.permute.xlu0 %591 }
 0xea2   :  { %v594_v34 = vadd.f32 %v1568_v31, %v592_v32 }
 0xea4   :  { %v1355_v35 = vpop.eup %1354  ;;  %vm601_vm5 = vcmp.gt.f32.partialorder %v594_v34, %v600_v33  ;;  %v603_v37 = vmax.f32 %v600_v33, %v594_v34 }
 0xea5   :  { %v754_v38 = vmul.f32 0.6931472, %v1355_v35  ;;  %v1684_v39 = vsel %vm601_vm5, 3, %v599_v29 }
 0xea6   :  { %v606_v40 = vadd.f32 %v604_v36, %v603_v37 }
 0xea7   :  { %v755_v41 = vadd.f32 %v754_v38, %v746_v9 }
 0xea8   :  { %679 = vperm.xlu0 %1256, %v606_v40   ;;  %669 = vperm.xlu1 %1254, %v606_v40  }
 0xea9   :  { %v758_v42 = vrot.slane %v755_v41, 2  ;;  %v756_v5 = vsub.f32 %v1660_v54, %v755_v41 }
 0xeab   :  { %v1687_v43 = vadd.f32 %v758_v42, %v1631_v61 }
 0xeac   :  { %1255 = vset.pattern.permute.xlu1 %v1418_v13  ;;  %1262 = vset.pattern.permute.xlu0 %v1418_v13 }
 0xead   :  { %674 = vperm.xlu1 %1255, %v606_v40  }
 0xeb1   :  { %1257 = vset.pattern.permute.xlu1 %v1419_v14 }
 0xeb2   :  { %797 = vperm.xlu1 %1257, %v756_v5  }
 0xeb6   :  { %1258 = vset.pattern.permute.xlu1 %v1418_v13 }
 0xeb7   :  { %802 = vperm.xlu1 %1258, %v756_v5  }
 0xebb   :  { %1259 = vset.pattern.permute.xlu1 %v1420_v20 }
 0xebc   :  { %807 = vperm.xlu1 %1259, %v756_v5  }
 0xec0   :  { %1260 = vset.pattern.permute.xlu1 %v1421_v21 }
 0xec1   :  { %812 = vperm.xlu1 %1260, %v756_v5  }
 0xec5   :  { %684 = vperm.xlu1 %1260, %v606_v40  }
 0xec9   :  { %1261 = vset.pattern.permute.xlu1 %v1419_v14 }
 0xf27   :  { %v670_v61 = vpop.permute.xlu1 %669  ;;  %v680_v44 = vpop.permute.xlu0 %679 }
 0xf28   :  { %v672_v48 = vadd.f32 %v1555_v24, %v670_v61  ;;  %v682_v51 = vadd.f32 %v1560_v26, %v680_v44 }
 0xf2c   :  { %v675_v47 = vpop.permute.xlu1 %674 }
 0xf2d   :  { %v677_v50 = vadd.f32 %v1550_v23, %v675_v47 }
 0xf2f   :  { %vm688_vm6 = vcmp.gt.f32.partialorder %v677_v50, %v672_v48  ;;  %v690_v52 = vmax.f32 %v672_v48, %v677_v50 }
 0xf30   :  { %v689_v53 = vsel %vm688_vm6, 1, %v1419_v14 }
 0xf31   :  { %vm691_vm7 = vcmp.gt.f32.partialorder %v682_v51, %v690_v52  ;;  %v798_v54 = vpop.permute.xlu1 %797  ;;  %v693_v9 = vmax.f32 %v690_v52, %v682_v51 }
 0xf32   :  { %v692_v55 = vsel %vm691_vm7, 2, %v689_v53  ;;  %v800_v59 = vadd.f32 %v1555_v24, %v798_v54  ;;  %v792_v54 = vrot.slane %v1625_v46, 2 }
 0xf36   :  { %v803_v56 = vpop.permute.xlu1 %802 }
 0xf37   :  { %v805_v57 = vadd.f32 %v1550_v23, %v803_v56  ;;  %v1733_v56 = vld [vmem:[%s1904_s5 + $0x3] ss:$0 sm:$0xff] }
 0xf39   :  { %v816_v63 = vmax.f32 %v800_v59, %v805_v57 }
 0xf3b   :  { %v808_v58 = vpop.permute.xlu1 %807 }
 0xf3c   :  { %v810_v60 = vadd.f32 %v1560_v26, %v808_v58  ;;  %v1739_v58 = vld [vmem:[%s1904_s5 + $0x4] ss:$0 sm:$0xff] }
 0xf3e   :  { %v817_v18 = vmax.f32 %v816_v63, %v810_v60 }
 0xf40   :  { %v813_v0 = vpop.permute.xlu1 %812 }
 0xf41   :  { %v815_v1 = vadd.f32 %v1568_v31, %v813_v0  ;;  %v1745_v0 = vld [vmem:[%s1904_s5 + $0x5] ss:$0 sm:$0xff] }
 0xf43   :  { %v818_v2 = vmax.f32 %v817_v18, %v815_v1 }
 0xf44   :  { %v685_v49 = vpop.permute.xlu1 %684 }
 0xf45   :  { %v819_v62 = vsub.f32 %v800_v59, %v818_v2  ;;  %v822_v3 = vsub.f32 %v805_v57, %v818_v2  ;;  %v826_v4 = vsub.f32 %v810_v60, %v818_v2  ;;  %v830_v8 = vsub.f32 %v815_v1, %v818_v2 }
 0xf46   :  { %v687_v10 = vadd.f32 %v1568_v31, %v685_v49 }
 0xf47   :  { %v820_v6 = vmul.f32 1.442695, %v819_v62  ;;  %v823_v11 = vmul.f32 1.442695, %v822_v3  ;;  %v827_v12 = vmul.f32 1.442695, %v826_v4 }
 0xf48   :  { %vm694_vm8 = vcmp.gt.f32.partialorder %v687_v10, %v693_v9  ;;  %v696_v15 = vmax.f32 %v693_v9, %v687_v10  ;;  %v831_v17 = vmul.f32 1.442695, %v830_v8  ;;  %v1752_v3 = vld [vmem:[%s1904_s5 + $0x6] ss:$0 sm:$0xff]  ;;  %v888_v8 = vrot.slane %v1625_v46, 4  ;;  %s1422_s5 = smov 1  }
 0xf49   :  { %1356 = vpow2.f32 %v820_v6  ;;  %v1706_v16 = vsel %vm694_vm8, 3, %v692_v55 }
 0xf4a   :  { %1358 = vpow2.f32 %v823_v11  ;;  %v697_v19 = vadd.f32 %v696_v15, %v1625_v46 }
 0xf4b   :  { %1360 = vpow2.f32 %v827_v12 }
 0xf4c   :  { %768 = vperm.xlu0 %1262, %v697_v19   ;;  %763 = vperm.xlu1 %1261, %v697_v19   ;;  %1362 = vpow2.f32 %v831_v17 }
 0xf50   :  { %1263 = vset.pattern.permute.xlu1 %v1420_v20  ;;  %1269 = vset.pattern.permute.xlu0 %v1419_v14 }
 0xf51   :  { %773 = vperm.xlu1 %1263, %v697_v19  }
 0xf53   :  { %v1357_v22 = vpop.eup %1356 }
 0xf54   :  { %v1359_v25 = vpop.eup %1358 }
 0xf55   :  { %1264 = vset.pattern.permute.xlu1 %v1421_v21  ;;  %v825_v27 = vadd.f32 %v1359_v25, %v1357_v22  ;;  %v1361_v28 = vpop.eup %1360 }
 0xf56   :  { %778 = vperm.xlu1 %1264, %v697_v19   ;;  %v1363_v30 = vpop.eup %1362 }
 0xf57   :  { %v829_v29 = vadd.f32 %v1361_v28, %v825_v27 }
 0xf59   :  { %v833_v32 = vadd.f32 %v1363_v30, %v829_v29 }
 0xf5a   :  { %1265 = vset.pattern.permute.xlu1 %v1419_v14 }
 0xf5b   :  { %1364 = vlog2.f32 %v833_v32 }
 0xf65   :  { %v1365_v33 = vpop.eup %1364 }
 0xf66   :  { %v835_v34 = vmul.f32 0.6931472, %v1365_v33 }
 0xf68   :  { %v836_v35 = vadd.f32 %v835_v34, %v818_v2 }
 0xf6a   :  { %v838_v36 = vrot.slane %v836_v35, 6 }
 0xf6c   :  { %v1714_v37 = vadd.f32 %v838_v36, %v1625_v46 }
 0xf6e   :  { %v841_v38 = vsel %vm459_vm10, %v1714_v37, -inf }
 0xf6f   :  { %842 = vmax.xlane.f32.xlu0 %v841_v38 }
 0xfcb   :  { %v769_v40 = vpop.permute.xlu0 %768  ;;  %v764_v41 = vpop.permute.xlu1 %763 }
 0xfcc   :  { %v771_v42 = vadd.f32 %v1550_v23, %v769_v40  ;;  %v766_v5 = vadd.f32 %v1555_v24, %v764_v41 }
 0xfce   :  { %vm782_vm9 = vcmp.gt.f32.partialorder %v771_v42, %v766_v5  ;;  %v784_v44 = vmax.f32 %v766_v5, %v771_v42 }
 0xfcf   :  { %v783_v48 = vsel %vm782_vm9, 1, %v1419_v14 }
 0xfd0   :  { %v774_v61 = vpop.permute.xlu1 %773 }
 0xfd1   :  { %v776_v47 = vadd.f32 %v1560_v26, %v774_v61 }
 0xfd3   :  { %vm785_vm12 = vcmp.gt.f32.partialorder %v776_v47, %v784_v44  ;;  %v787_v52 = vmax.f32 %v784_v44, %v776_v47 }
 0xfd4   :  { %v786_v50 = vsel %vm785_vm12, 2, %v783_v48  ;;  %v983_v48 = vrot.slane %v1625_v46, 6 }
 0xfd5   :  { %v779_v51 = vpop.permute.xlu1 %778 }
 0xfd6   :  { %v781_v53 = vadd.f32 %v1568_v31, %v779_v51 }
 0xfd8   :  { %vm788_vm13 = vcmp.gt.f32.partialorder %v781_v53, %v787_v52  ;;  %v790_v55 = vmax.f32 %v787_v52, %v781_v53 }
 0xfd9   :  { %v1724_v23 = vsel %vm788_vm13, 3, %v786_v50 }
 0xfda   :  { %v794_v24 = vadd.f32 %v792_v54, %v790_v55 }
 0xfdc   :  { %860 = vperm.xlu1 %1265, %v794_v24  }
 0xfe0   :  { %1266 = vset.pattern.permute.xlu1 %v1418_v13 }
 0xfe1   :  { %865 = vperm.xlu1 %1266, %v794_v24  }
 0xfe5   :  { %1267 = vset.pattern.permute.xlu1 %v1420_v20 }
 0xfe6   :  { %870 = vperm.xlu1 %1267, %v794_v24  }
 0xfea   :  { %1268 = vset.pattern.permute.xlu1 %v1421_v21 }
 0xfeb   :  { %875 = vperm.xlu1 %1268, %v794_v24  }
 0xfef   :  { %1270 = vset.pattern.permute.xlu1 %v1418_v13 }
 0xffc   :  { %v843_v11 = vpop.xlane.xlu0 %842 }
 0xffd   :  { %v844_v12 = vsub.f32 %v1714_v37, %v843_v11 }
 0xfff   :  { %v845_v15 = vmul.f32 1.442695, %v844_v12 }
0x1001   :  { %1366 = vpow2.f32 %v845_v15 }
0x100b   :  { %v1367_v17 = vpop.eup %1366 }
0x100c   :  { %v847_v19 = vsel %vm459_vm10, %v1367_v17, 0.0 }
0x105b   :  { %v861_v26 = vpop.permute.xlu1 %860 }
0x105c   :  { %v863_v57 = vadd.f32 %v1733_v56, %v861_v26 }
0x1060   :  { %v866_v31 = vpop.permute.xlu1 %865 }
0x1061   :  { %v868_v59 = vadd.f32 %v1739_v58, %v866_v31 }
0x1063   :  { %vm879_vm14 = vcmp.gt.f32.partialorder %v868_v59, %v863_v57  ;;  %v881_v63 = vmax.f32 %v863_v57, %v868_v59 }
0x1064   :  { %v880_v1 = vsel %vm879_vm14, 1, %v1419_v14 }
0x1065   :  { %v871_v60 = vpop.permute.xlu1 %870 }
0x1066   :  { %v873_v18 = vadd.f32 %v1745_v0, %v871_v60 }
0x1068   :  { %vm882_vm15 = vcmp.gt.f32.partialorder %v873_v18, %v881_v63  ;;  %v884_v62 = vmax.f32 %v881_v63, %v873_v18 }
0x1069   :  { %v883_v2 = vsel %vm882_vm15, 2, %v880_v1 }
0x106a   :  { %v876_v49 = vpop.permute.xlu1 %875 }
0x106b   :  { %v878_v4 = vadd.f32 %v1752_v3, %v876_v49 }
0x106d   :  { %vm885_vm0 = vcmp.gt.f32.partialorder %v878_v4, %v884_v62  ;;  %v887_v9 = vmax.f32 %v884_v62, %v878_v4 }
0x106e   :  { %v1756_v10 = vsel %vm885_vm0, 3, %v883_v2 }
0x106f   :  { %v890_v6 = vadd.f32 %v888_v8, %v887_v9 }
0x1071   :  { %960 = vperm.xlu1 %1270, %v890_v6   ;;  %955 = vperm.xlu0 %1269, %v890_v6  }
0x1075   :  { %1272 = vset.pattern.permute.xlu0 %v1421_v21  ;;  %1271 = vset.pattern.permute.xlu1 %v1420_v20 }
0x1076   :  { %970 = vperm.xlu0 %1272, %v890_v6  }
0x107a   :  { %1275 = vset.pattern.permute.xlu0 %v1420_v20 }
0x1095   :  { %848 = vadd.xlane.f32.xlu1 %v847_v19 }
0x10a6   :  { %965 = vperm.xlu1 %1271, %v890_v6  }
0x10aa   :  { %1273 = vset.pattern.permute.xlu1 %v1419_v14 }
0x10f0   :  { %v961_v22 = vpop.permute.xlu1 %960  ;;  %v956_v25 = vpop.permute.xlu0 %955 }
0x10f1   :  { %v963_v27 = vadd.f32 %v1739_v58, %v961_v22  ;;  %v958_v28 = vadd.f32 %v1733_v56, %v956_v25 }
0x10f3   :  { %vm974_vm1 = vcmp.gt.f32.partialorder %v963_v27, %v958_v28  ;;  %v976_v32 = vmax.f32 %v958_v28, %v963_v27 }
0x10f4   :  { %v975_v34 = vsel %vm974_vm1, 1, %v1419_v14 }
0x10f5   :  { %v971_v29 = vpop.permute.xlu0 %970 }
0x10f6   :  { %v973_v35 = vadd.f32 %v1752_v3, %v971_v29 }
0x1122   :  { %v849_v20 = vpop.xlane.xlu1 %848 }
0x1123   :  { %1368 = vlog2.f32 %v849_v20 }
0x1126   :  { %v966_v30 = vpop.permute.xlu1 %965 }
0x1127   :  { %v968_v33 = vadd.f32 %v1745_v0, %v966_v30 }
0x1129   :  { %vm977_vm10 = vcmp.gt.f32.partialorder %v968_v33, %v976_v32  ;;  %v979_v36 = vmax.f32 %v976_v32, %v968_v33 }
0x112a   :  { %v978_v38 = vsel %vm977_vm10, 2, %v975_v34 }
0x112b   :  { %vm980_vm3 = vcmp.gt.f32.partialorder %v973_v35, %v979_v36  ;;  %v982_v47 = vmax.f32 %v979_v36, %v973_v35 }
0x112c   :  { %v1769_v40 = vsel %vm980_vm3, 3, %v978_v38 }
0x112d   :  { %v1369_v41 = vpop.eup %1368  ;;  %v1776_v51 = vadd.f32 %v983_v48, %v982_v47 }
0x112e   :  { %v851_v42 = vmul.f32 0.6931472, %v1369_v41 }
0x1130   :  { %v852_v5 = vadd.f32 %v851_v42, %v843_v11 }
0x1132   :  { %v853_v61 = vsub.f32 %v1714_v37, %v852_v5  ;;  %v855_v44 = vrot.slane %v852_v5, 4 }
0x1134   :  { %893 = vperm.xlu1 %1273, %v853_v61   ;;  %903 = vperm.xlu0 %1275, %v853_v61   ;;  %v1774_v50 = vadd.f32 %v855_v44, %v1687_v43 }
0x1138   :  { %1274 = vset.pattern.permute.xlu1 %v1418_v13  ;;  %987 = vrot.lane.b32.xlu0 %v1776_v51, %s1422_s5 }
0x1139   :  { %898 = vperm.xlu1 %1274, %v853_v61   ;;  %1277 = vset.pattern.permute.xlu0 %v1421_v21 }
0x113d   :  { %1276 = vset.pattern.permute.xlu1 %v1421_v21 }
0x113e   :  { %908 = vperm.xlu1 %1276, %v853_v61  }
0x1142   :  { %992 = vrot.lane.b32.xlu1 %v1776_v51, %s1423_s4 }
0x1146   :  { %1004 = vrot.lane.b32.xlu1 %v1776_v51, %s1424_s24 }
0x11b3   :  { %v894_v43 = vpop.permute.xlu1 %893  ;;  %v904_v13 = vpop.permute.xlu0 %903 }
0x11b4   :  { %v896_v53 = vadd.f32 %v1733_v56, %v894_v43  ;;  %v906_v55 = vadd.f32 %v1745_v0, %v904_v13 }
0x11b7   :  { %v988_v37 = vpop.permute.xlu0 %987 }
0x11b8   :  { %vm990_vm4 = vcmp.gt.f32.partialorder %v1776_v51, %v988_v37  ;;  %v899_v52 = vpop.permute.xlu1 %898 }
0x11b9   :  { %v991_v54 = vsel %vm990_vm4, 1, %v1419_v14  ;;  %v901_v21 = vadd.f32 %v1739_v58, %v899_v52 }
0x11ba   :  { %1001 = vrot.lane.b32.xlu1 %v991_v54, %s1422_s5 }
0x11bb   :  { %v912_v24 = vmax.f32 %v896_v53, %v901_v21 }
0x11bd   :  { %v909_v26 = vpop.permute.xlu1 %908  ;;  %v913_v31 = vmax.f32 %v912_v24, %v906_v55 }
0x11be   :  { %v911_v57 = vadd.f32 %v1752_v3, %v909_v26 }
0x11c0   :  { %v914_v59 = vmax.f32 %v913_v31, %v911_v57 }
0x11c1   :  { %v993_v60 = vpop.permute.xlu1 %992 }
0x11c2   :  { %v915_v63 = vsub.f32 %v896_v53, %v914_v59  ;;  %v918_v18 = vsub.f32 %v901_v21, %v914_v59  ;;  %v922_v1 = vsub.f32 %v906_v55, %v914_v59  ;;  %v926_v2 = vsub.f32 %v911_v57, %v914_v59 }
0x11c3   :  { %v995_v56 = vmax.f32 %v1776_v51, %v993_v60 }
0x11c4   :  { %v916_v14 = vmul.f32 1.442695, %v915_v63  ;;  %v919_v49 = vmul.f32 1.442695, %v918_v18  ;;  %v923_v58 = vmul.f32 1.442695, %v922_v1 }
0x11c5   :  { %997 = vrot.lane.b32.xlu0 %v995_v56, %s1425_s25  ;;  %v1005_v0 = vpop.permute.xlu1 %1004  ;;  %v927_v4 = vmul.f32 1.442695, %v926_v2 }
0x11c6   :  { %1370 = vpow2.f32 %v916_v14  ;;  %v1007_v62 = vmax.f32 %v995_v56, %v1005_v0 }
0x11c7   :  { %1372 = vpow2.f32 %v919_v49 }
0x11c8   :  { %1009 = vrot.lane.b32.xlu1 %v1007_v62, %s1426_s26  ;;  %1374 = vpow2.f32 %v923_v58 }
0x11c9   :  { %1376 = vpow2.f32 %v927_v4 }
0x11d0   :  { %v1371_v3 = vpop.eup %1370 }
0x11d1   :  { %v1373_v8 = vpop.eup %1372 }
0x11d2   :  { %v921_v9 = vadd.f32 %v1373_v8, %v1371_v3  ;;  %v1375_v6 = vpop.eup %1374 }
0x11d3   :  { %v1377_v12 = vpop.eup %1376 }
0x11d4   :  { %v925_v11 = vadd.f32 %v1375_v6, %v921_v9 }
0x11d6   :  { %v929_v15 = vadd.f32 %v1377_v12, %v925_v11 }
0x11d8   :  { %1378 = vlog2.f32 %v929_v15 }
0x11e2   :  { %v1379_v17 = vpop.eup %1378 }
0x11e3   :  { %v931_v19 = vmul.f32 0.6931472, %v1379_v17 }
0x11e5   :  { %v932_v22 = vadd.f32 %v931_v19, %v914_v59 }
0x11e7   :  { %v934_v25 = vrot.slane %v932_v22, 6 }
0x11e9   :  { %v936_v27 = vadd.f32 %v934_v25, %v1625_v46 }
0x11eb   :  { %v937_v28 = vsel %vm556_vm11, %v936_v27, -inf }
0x11ec   :  { %938 = vmax.xlane.f32.xlu0 %v937_v28 }
0x1202   :  { %1045 = vrot.lane.b32.xlu0 %v1724_v23, %s1426_s26 }
0x1206   :  { %1073 = vrot.lane.b32.xlu0 %v1684_v39, %s1426_s26 }
0x120a   :  { %1081 = vrot.lane.b32.xlu0 %v1684_v39, %s1422_s5 }
0x120e   :  { %1091 = vrot.lane.b32.xlu0 %v1670_v7, %s1425_s25 }
0x1212   :  { %1101 = vrot.lane.b32.xlu0 %v1654_v45, %s1426_s26 }
0x1216   :  { %1109 = vrot.lane.b32.xlu0 %v1654_v45, %s1422_s5 }
0x122c   :  { %v1002_v20 = vpop.permute.xlu1 %1001 }
0x1237   :  { %v998_v46 = vpop.permute.xlu0 %997 }
0x1238   :  { %vm1000_vm5 = vcmp.gt.f32.partialorder %v1776_v51, %v998_v46 }
0x1239   :  { %v1003_v29 = vsel %vm1000_vm5, 2, %v1002_v20 }
0x123a   :  { %1013 = vrot.lane.b32.xlu1 %v1003_v29, %s1422_s5  ;;  %v1010_v36 = vpop.permute.xlu1 %1009 }
0x123b   :  { %vm1012_vm6 = vcmp.gt.f32.partialorder %v1776_v51, %v1010_v36 }
0x123e   :  { %1017 = vrot.lane.b32.xlu1 %v1769_v40, %s1426_s26 }
0x1242   :  { %1021 = vrot.lane.b32.xlu1 %v1769_v40, %s1425_s25 }
0x1246   :  { %1025 = vrot.lane.b32.xlu1 %v1769_v40, %s1422_s5 }
0x124a   :  { %1031 = vrot.lane.b32.xlu1 %v1756_v10, %s1426_s26 }
0x124e   :  { %1035 = vrot.lane.b32.xlu1 %v1756_v10, %s1425_s25 }
0x1252   :  { %1039 = vrot.lane.b32.xlu1 %v1756_v10, %s1422_s5 }
0x1256   :  { %1049 = vrot.lane.b32.xlu1 %v1724_v23, %s1425_s25 }
0x125a   :  { %1053 = vrot.lane.b32.xlu1 %v1724_v23, %s1422_s5 }
0x125e   :  { %1059 = vrot.lane.b32.xlu1 %v1706_v16, %s1426_s26 }
0x1262   :  { %1063 = vrot.lane.b32.xlu1 %v1706_v16, %s1425_s25 }
0x1266   :  { %1067 = vrot.lane.b32.xlu1 %v1706_v16, %s1422_s5 }
0x126a   :  { %1077 = vrot.lane.b32.xlu1 %v1684_v39, %s1425_s25 }
0x126e   :  { %1087 = vrot.lane.b32.xlu1 %v1670_v7, %s1426_s26 }
0x1272   :  { %1095 = vrot.lane.b32.xlu1 %v1670_v7, %s1422_s5 }
0x1276   :  { %1105 = vrot.lane.b32.xlu1 %v1654_v45, %s1425_s25 }
0x1279   :  { %v1843_v30 = vpop.xlane.xlu0 %938 }
0x127a   :  { %v940_v32 = vsub.f32 %v936_v27, %v1843_v30 }
0x127c   :  { %v941_v33 = vmul.f32 1.442695, %v940_v32 }
0x127d   :  { %v1046_v24 = vpop.permute.xlu0 %1045 }
0x127e   :  { %1380 = vpow2.f32 %v941_v33 }
0x1281   :  { %v1074_v60 = vpop.permute.xlu0 %1073 }
0x1285   :  { %v1082_v1 = vpop.permute.xlu0 %1081 }
0x1288   :  { %v1381_v34 = vpop.eup %1380 }
0x1289   :  { %v943_v35 = vsel %vm556_vm11, %v1381_v34, 0.0 }
0x129a   :  { %944 = vadd.xlane.f32.xlu1 %v943_v35 }
0x12ac   :  { %v1014_v38 = vpop.permute.xlu1 %1013 }
0x12ad   :  { %v1848_v42 = vsel %vm1012_vm6, 3, %v1014_v38 }
0x12ae   :  { %vm1016_vm7 = vcmp.eq.s32.totalorder %v1848_v42, 0  ;;  %vm1020_vm8 = vcmp.eq.s32.totalorder %v1848_v42, 1  ;;  %vm1024_vm9 = vcmp.eq.s32.totalorder %v1848_v42, 2  ;;  %vm1028_vm11 = vcmp.eq.s32.totalorder %v1848_v42, 3 }
0x12b0   :  { %v1018_v41 = vpop.permute.xlu1 %1017 }
0x12b1   :  { %v1019_v61 = vsel %vm1016_vm7, %v1018_v41, 0 }
0x12b4   :  { %v1022_v5 = vpop.permute.xlu1 %1021 }
0x12b5   :  { %v1023_v47 = vsel %vm1020_vm8, %v1022_v5, %v1019_v61 }
0x12b8   :  { %v1026_v44 = vpop.permute.xlu1 %1025 }
0x12b9   :  { %v1027_v48 = vsel %vm1024_vm9, %v1026_v44, %v1023_v47 }
0x12ba   :  { %v1855_v13 = vsel %vm1028_vm11, %v1769_v40, %v1027_v48 }
0x12bb   :  { %vm1030_vm12 = vcmp.eq.s32.totalorder %v1855_v13, 0  ;;  %vm1034_vm13 = vcmp.eq.s32.totalorder %v1855_v13, 1  ;;  %vm1038_vm14 = vcmp.eq.s32.totalorder %v1855_v13, 2  ;;  %vm1042_vm15 = vcmp.eq.s32.totalorder %v1855_v13, 3 }
0x12bc   :  { %v1032_v43 = vpop.permute.xlu1 %1031 }
0x12bd   :  { %v1033_v37 = vsel %vm1030_vm12, %v1032_v43, 0 }
0x12c0   :  { %v1036_v51 = vpop.permute.xlu1 %1035 }
0x12c1   :  { %v1037_v52 = vsel %vm1034_vm13, %v1036_v51, %v1033_v37 }
0x12c4   :  { %v1040_v53 = vpop.permute.xlu1 %1039 }
0x12c5   :  { %v1041_v54 = vsel %vm1038_vm14, %v1040_v53, %v1037_v52 }
0x12c6   :  { %v1043_v21 = vsel %vm1042_vm15, %v1756_v10, %v1041_v54 }
0x12c7   :  { %vm1044_vm0 = vcmp.eq.s32.totalorder %v1043_v21, 0  ;;  %vm1048_vm1 = vcmp.eq.s32.totalorder %v1043_v21, 1  ;;  %vm1052_vm10 = vcmp.eq.s32.totalorder %v1043_v21, 2  ;;  %vm1056_vm3 = vcmp.eq.s32.totalorder %v1043_v21, 3 }
0x12c8   :  { %v1050_v55 = vpop.permute.xlu1 %1049  ;;  %v1047_v40 = vsel %vm1044_vm0, %v1046_v24, 0 }
0x12c9   :  { %v1051_v31 = vsel %vm1048_vm1, %v1050_v55, %v1047_v40 }
0x12cc   :  { %v1054_v26 = vpop.permute.xlu1 %1053 }
0x12cd   :  { %v1055_v57 = vsel %vm1052_vm10, %v1054_v26, %v1051_v31 }
0x12ce   :  { %v1057_v63 = vsel %vm1056_vm3, %v1724_v23, %v1055_v57  ;;  %v1092_v23 = vpop.permute.xlu0 %1091 }
0x12cf   :  { %vm1058_vm4 = vcmp.eq.s32.totalorder %v1057_v63, 0  ;;  %vm1062_vm5 = vcmp.eq.s32.totalorder %v1057_v63, 1  ;;  %vm1066_vm6 = vcmp.eq.s32.totalorder %v1057_v63, 2  ;;  %vm1070_vm7 = vcmp.eq.s32.totalorder %v1057_v63, 3 }
0x12d0   :  { %v1060_v59 = vpop.permute.xlu1 %1059 }
0x12d1   :  { %v1061_v2 = vsel %vm1058_vm4, %v1060_v59, 0 }
0x12d4   :  { %v1064_v18 = vpop.permute.xlu1 %1063 }
0x12d5   :  { %v1065_v10 = vsel %vm1062_vm5, %v1064_v18, %v1061_v2  ;;  %vm1143_vm5 = vcmask 1024  }
0x12d8   :  { %v1068_v56 = vpop.permute.xlu1 %1067 }
0x12d9   :  { %v1069_v14 = vsel %vm1066_vm6, %v1068_v56, %v1065_v10  ;;  %vm1128_vm6 = vcmask 7168  }
0x12da   :  { %v1864_v49 = vsel %vm1070_vm7, %v1706_v16, %v1069_v14  ;;  %v1102_v16 = vpop.permute.xlu0 %1101  ;;  %vm1130_vm7 = vcmask 15360  }
0x12db   :  { %vm1072_vm8 = vcmp.eq.s32.totalorder %v1864_v49, 0  ;;  %vm1076_vm9 = vcmp.eq.s32.totalorder %v1864_v49, 1  ;;  %vm1080_vm11 = vcmp.eq.s32.totalorder %v1864_v49, 2  ;;  %vm1084_vm12 = vcmp.eq.s32.totalorder %v1864_v49, 3 }
0x12dc   :  { %v1078_v58 = vpop.permute.xlu1 %1077  ;;  %v1075_v0 = vsel %vm1072_vm8, %v1074_v60, 0  ;;  %vm1132_vm8 = vcmask 23552  }
0x12dd   :  { %v1079_v62 = vsel %vm1076_vm9, %v1078_v58, %v1075_v0  ;;  %vm1135_vm9 = vcmask 39936  }
0x12de   :  { %v1083_v4 = vsel %vm1080_vm11, %v1082_v1, %v1079_v62  ;;  %v1110_v22 = vpop.permute.xlu0 %1109  ;;  %vm1137_vm11 = vcmask 48128  }
0x12df   :  { %v1085_v3 = vsel %vm1084_vm12, %v1684_v39, %v1083_v4  ;;  %vm1139_vm12 = vcmask 56320  }
0x12e0   :  { %v1088_v8 = vpop.permute.xlu1 %1087  ;;  %vm1086_vm13 = vcmp.eq.s32.totalorder %v1085_v3, 0  ;;  %vm1090_vm14 = vcmp.eq.s32.totalorder %v1085_v3, 1  ;;  %vm1094_vm15 = vcmp.eq.s32.totalorder %v1085_v3, 2  ;;  %vm1098_vm0 = vcmp.eq.s32.totalorder %v1085_v3, 3 }
0x12e1   :  { %v1089_v9 = vsel %vm1086_vm13, %v1088_v8, 0  ;;  %vm1141_vm13 = vcmask 58368  }
0x12e2   :  { %v1093_v6 = vsel %vm1090_vm14, %v1092_v23, %v1089_v9 }
0x12e4   :  { %v1096_v11 = vpop.permute.xlu1 %1095 }
0x12e5   :  { %v1097_v12 = vsel %vm1094_vm15, %v1096_v11, %v1093_v6 }
0x12e6   :  { %v1099_v15 = vsel %vm1098_vm0, %v1670_v7, %v1097_v12 }
0x12e7   :  { %vm1100_vm1 = vcmp.eq.s32.totalorder %v1099_v15, 0  ;;  %vm1104_vm10 = vcmp.eq.s32.totalorder %v1099_v15, 1  ;;  %vm1108_vm3 = vcmp.eq.s32.totalorder %v1099_v15, 2  ;;  %vm1112_vm4 = vcmp.eq.s32.totalorder %v1099_v15, 3 }
0x12e8   :  { %v1106_v17 = vpop.permute.xlu1 %1105  ;;  %v1103_v19 = vsel %vm1100_vm1, %v1102_v16, 0 }
0x12e9   :  { %v1107_v25 = vsel %vm1104_vm10, %v1106_v17, %v1103_v19 }
0x12ea   :  { %v1111_v39 = vsel %vm1108_vm3, %v1110_v22, %v1107_v25 }
0x12eb   :  { %v1113_v27 = vsel %vm1112_vm4, %v1654_v45, %v1111_v39 }
0x12ec   :  { %1114 = vrot.lane.b32.xlu0 %v1113_v27, %s1427_s27 }
0x12f0   :  { %1116 = vrot.lane.b32.xlu0 %v1099_v15, %s1424_s24 }
0x12f4   :  { %1118 = vrot.lane.b32.xlu0 %v1085_v3, %s1423_s4 }
0x12f8   :  { %1120 = vrot.lane.b32.xlu0 %v1057_v63, %s1422_s5 }
0x12fc   :  { %1122 = vrot.lane.b32.xlu0 %v1043_v21, %s1425_s25 }
0x1300   :  { %1124 = vrot.lane.b32.xlu0 %v1855_v13, %s1426_s26 }
0x1304   :  { %1126 = vrot.lane.b32.xlu0 %v1848_v42, %s1428_s28 }
0x1327   :  { %v945_v7 = vpop.xlane.xlu1 %944 }
0x1328   :  { %1382 = vlog2.f32 %v945_v7 }
0x1332   :  { %v1383_v28 = vpop.eup %1382 }
0x1333   :  { %v947_v45 = vmul.f32 0.6931472, %v1383_v28 }
0x1335   :  { %v948_v46 = vadd.f32 %v947_v45, %v1843_v30 }
0x1337   :  { %v950_v20 = vrot.slane %v948_v46, 6 }
0x1339   :  { %v952_v29 = vadd.f32 %v950_v20, %v1774_v50 }
0x133b   :  { %1144 = vst.msk [vmem:[%s1905_s6] sm:$0x3] %vm1143_vm5, %v952_v29  ;;  %s1388_s6 = scalar_lea.vmem %s1154_s8, 32 }
0x133c   :  { %p1389_p0 = scmp.ne.s32.totalorder %s1154_s8, %s1388_s6  ;;  %p1394_p2 = scmp.lt.s32.totalorder %s1388_s6, %s1388_s6 }
0x133e   :  { %p1395_p3 = por %p1394_p2, %p1393_p1 }
0x1340   :  { %p1396_p4 = pnand %p1395_p3, %p1389_p0 }
0x135e   :  { %v1115_v32 = vpop.permute.xlu0 %1114 }
0x1362   :  { %v1117_v33 = vpop.permute.xlu0 %1116 }
0x1363   :  { %v1129_v38 = vsel %vm1128_vm6, %v1115_v32, %v1117_v33 }
0x1366   :  { %v1119_v34 = vpop.permute.xlu0 %1118 }
0x1367   :  { %v1131_v41 = vsel %vm1130_vm7, %v1129_v38, %v1119_v34 }
0x1368   :  { %v1133_v42 = vsel %vm1132_vm8, %v1131_v41, %v1864_v49 }
0x136a   :  { %v1121_v35 = vpop.permute.xlu0 %1120 }
0x136b   :  { %v1134_v50 = vsel %vm39_vm2, %v1133_v42, %v1121_v35 }
0x136e   :  { %v1123_v36 = vpop.permute.xlu0 %1122 }
0x136f   :  { %v1136_v5 = vsel %vm1135_vm9, %v1134_v50, %v1123_v36 }
0x1372   :  { %v1125_v30 = vpop.permute.xlu0 %1124 }
0x1373   :  { %v1138_v61 = vsel %vm1137_vm11, %v1136_v5, %v1125_v30 }
0x1376   :  { %v1127_v44 = vpop.permute.xlu0 %1126 }
0x1377   :  { %v1140_v47 = vsel %vm1139_vm12, %v1138_v61, %v1127_v44 }
0x1378   :  { %1142 = vst.msk [vmem:[#allocation2] sm:$0x3] %vm1141_vm13, %v1140_v47 }
0x1379   :  { %1399 = shalt.err (!%p1396_p4)
}
0x137a   :  { %s1400_s10 = scalar_lea.hbm %s1906_s7, 32 }
0x137b   :  { %p1401_p5 = scmp.ne.s32.totalorder %s1906_s7, %s1400_s10  ;;  %p1404_p6 = scmp.lt.u32.totalorder %s1400_s10, %s1906_s7 }
0x137d   :  { %p1406_p7 = pnand %p1404_p6, %p1401_p5 }
0x137f   :  { %1409 = shalt.err (!%p1406_p7)
}
0x1380   :  { %1156 = dma.vmem_to_hbm [thread:$0]  %s1154_s8, 32, %s1906_s7, [#allocation3]  }
0x1381   :  { %1410 = dma.done.wait [#allocation3], 32  }
0x1382   :  { %1411 = vsyncadd [#allocation3], 4294967264 }
0x1383   :  { %1162 = vsyncpa [#allocation3], 1 }

</bundles_post_ra>
